<compile_context>
chip_gen: v7x
topology: tpu7x:2x2x1
jax: 0.10.0
libtpu: 0.0.40
codegen_flags: <defaults>
</compile_context>

<pallas_src>
import functools

import numpy as np
import jax
import jax.numpy as jnp
from jax import lax
from jax.experimental import pallas as pl
from jax.experimental.pallas import tpu as pltpu

LN_EPS = 0.001


# --------------------------------------------------------------------------- #
# Pass 1: per-batch fused K/V projection, written per-head-contiguous to HBM. #
# --------------------------------------------------------------------------- #
def _kv_proj_kernel(k_ref, v_ref, wk_ref, wv_ref, ko_ref, vo_ref, *,
                    n_heads, d_k, d_v):
    k_all = jnp.dot(k_ref[0], wk_ref[...],
                    preferred_element_type=jnp.float32)        # [Lk, H*Dk]
    v_all = jnp.dot(v_ref[0], wv_ref[...],
                    preferred_element_type=jnp.float32)        # [Lk, H*Dv]
    for h in range(n_heads):                                   # once per batch elem
        ko_ref[0, h] = k_all[:, h * d_k:(h + 1) * d_k].astype(ko_ref.dtype)
        vo_ref[0, h] = v_all[:, h * d_v:(h + 1) * d_v].astype(vo_ref.dtype)


# --------------------------------------------------------------------------- #
# Pass 2: attention + output projection + residual + LayerNormalization.      #
# --------------------------------------------------------------------------- #
def _attn_kernel(*refs, n_heads, d_k, d_v, compute_dtype, emit_attn, approx_recip):
    if emit_attn:
        (q_ref, kp_ref, vp_ref, mask_ref, wq_ref, pw_ref, pb_ref,
         gamma_ref, beta_ref, o_ref, attn_ref, ctx_ref) = refs
    else:
        (q_ref, kp_ref, vp_ref, mask_ref, wq_ref, pw_ref, pb_ref,
         gamma_ref, beta_ref, o_ref, ctx_ref) = refs
        attn_ref = None

    H, Dk, Dv = n_heads, d_k, d_v
    x_q = q_ref[0]                                             # [TQ, D] f32 (residual)
    tq = x_q.shape[0]
    lk = mask_ref.shape[-1]

    # Fused Q projection for all heads; cast to compute dtype once.
    q_all = jnp.dot(x_q.astype(compute_dtype), wq_ref[...],
                    preferred_element_type=jnp.float32).astype(compute_dtype)

    # Mask bias broadcast hoisted out of the head loop (JAX does not CSE it).
    mask_bias = pl.broadcast_to((1.0 - mask_ref[0]) * jnp.float32(-10000.0),
                                (tq, lk))                      # [TQ, Lk]
    scale = jnp.float32(1.0 / np.sqrt(Dk))

    for h in range(H):                                         # static unroll
        q_h = q_all[:, h * Dk:(h + 1) * Dk]                    # [TQ, Dk]
        k_h = kp_ref[0, h]                                     # [Lk, Dk]
        v_h = vp_ref[0, h]                                     # [Lk, Dv]

        # Contract last dims of both operands -> no materialized K transpose.
        scores = lax.dot_general(
            q_h, k_h, (((1,), (1,)), ((), ())),
            preferred_element_type=jnp.float32)                # [TQ, Lk]
        scores = scores * scale + mask_bias

        m = jnp.max(scores, axis=-1, keepdims=True)
        e = jnp.exp(scores - m)
        denom = jnp.sum(e, axis=-1, keepdims=True)
        if approx_recip:
            attn = e * pl.reciprocal(denom, approx=True)
        else:
            attn = e / denom                                   # exact on the f32 path
        if attn_ref is not None:
            attn_ref[h, 0] = attn
        # TODO(synk): attention / projection dropout omitted (eval-mode identity).

        # Per-head context -> VMEM scratch at static column offset (bounds live range).
        ctx_ref[:, h * Dv:(h + 1) * Dv] = jnp.dot(
            attn.astype(compute_dtype), v_h,
            preferred_element_type=jnp.float32).astype(compute_dtype)

    # Single output projection over all heads: [TQ, H*Dv] x [H*Dv, D].
    proj = jnp.dot(ctx_ref[...], pw_ref[...], preferred_element_type=jnp.float32)

    # Residual + LayerNormalization (torch .std(): unbiased, eps added to std).
    y = proj + pb_ref[...] + x_q
    d = y.shape[-1]
    mean = jnp.mean(y, axis=-1, keepdims=True)
    var = jnp.sum((y - mean) ** 2, axis=-1, keepdims=True) * jnp.float32(1.0 / (d - 1))
    std = jnp.sqrt(var)
    if approx_recip:
        norm = (y - mean) * pl.reciprocal(std + jnp.float32(LN_EPS), approx=True)
    else:
        norm = (y - mean) / (std + jnp.float32(LN_EPS))
    o_ref[0] = gamma_ref[...] * norm + beta_ref[...]


# --------------------------------------------------------------------------- #
# Wrapper helpers.                                                             #
# --------------------------------------------------------------------------- #
def _vmem_capacity_bytes():
    try:
        return int(pltpu.get_tpu_info().vmem_capacity_bytes)
    except Exception:
        return 64 * 1024 * 1024          # conservative (v7x-class) fallback


def _vmem_limit(est_bytes, vmem_cap):
    # ~78% of physical: ~100 MiB on v5e/v6e (128 MiB), ~50 MiB on v7x (64 MiB).
    cap = int(vmem_cap * 0.78)
    want = max(32 << 20, int(est_bytes * 1.5) + (8 << 20))
    return max(1 << 20, min(cap, want))


def _pick_query_tile(lq, lk, n_heads, *, vmem_cap, emit_attn):
    small_vmem = vmem_cap < (96 << 20)                 # v7x-class (64 MiB per TC)
    max_tile = 256 if (small_vmem or lk >= 1024) else 512
    attn_budget = (12 << 20) if small_vmem else (32 << 20)
    cands = [c for c in (512, 256, 128, 64, 32, 16, 8) if c <= max_tile]
    for cand in cands:                                 # largest tile meeting budget
        if lq % cand != 0:
            continue
        if emit_attn and 2 * n_heads * cand * lk * 4 > attn_budget:
            continue
        return cand
    for cand in reversed(cands):                       # smallest divisor otherwise
        if lq % cand == 0:
            return cand
    return lq


def _const_spec(shape, buffered):
    index_map = lambda *args: (0,) * len(shape)
    if buffered:
        # Constant-index block: single-buffered (no point duplicating it in VMEM).
        return pl.BlockSpec(shape, index_map, pipeline_mode=pl.Buffered(1))
    return pl.BlockSpec(shape, index_map)


def _run(q, k_cd, v_cd, mask3, wq_f, wk_f, wv_f, pw, pb, g, bta, *,
         H, Dk, Dv, cd, return_attn, approx_recip, buffered, vmem_cap):
    B, Lq, D = q.shape
    Lk = k_cd.shape[1]
    ics, f32 = cd.itemsize, 4
    wbuf = 1 if buffered else 2

    # ----------------------- Pass 1: K/V projection ------------------------- #
    kv_kernel = functools.partial(_kv_proj_kernel, n_heads=H, d_k=Dk, d_v=Dv)
    kv_est = (2 * 2 * Lk * D * ics                            # k, v input blocks
              + wbuf * (D * H * Dk + D * H * Dv) * ics        # fused wk, wv
              + 2 * H * Lk * (Dk + Dv) * ics                  # projected outputs
              + Lk * H * (Dk + Dv) * f32)                     # live f32 matmul results
    k_proj, v_proj = pl.pallas_call(
        kv_kernel,
        out_shape=(jax.ShapeDtypeStruct((B, H, Lk, Dk), cd),
                   jax.ShapeDtypeStruct((B, H, Lk, Dv), cd)),
        grid_spec=pltpu.PrefetchScalarGridSpec(
            num_scalar_prefetch=0,
            grid=(B,),
            in_specs=[
                pl.BlockSpec((1, Lk, D), lambda bi: (bi, 0, 0)),    # k (compute dtype)
                pl.BlockSpec((1, Lk, D), lambda bi: (bi, 0, 0)),    # v (compute dtype)
                _const_spec((D, H * Dk), buffered),                 # fused w_k
                _const_spec((D, H * Dv), buffered),                 # fused w_v
            ],
            out_specs=[
                pl.BlockSpec((1, H, Lk, Dk), lambda bi: (bi, 0, 0, 0)),
                pl.BlockSpec((1, H, Lk, Dv), lambda bi: (bi, 0, 0, 0)),
            ]),
        compiler_params=pltpu.CompilerParams(
            dimension_semantics=("parallel",),
            vmem_limit_bytes=_vmem_limit(kv_est, vmem_cap)),
    )(k_cd, v_cd, wk_f, wv_f)

    # ----------------- Pass 2: attention + proj + LayerNorm ----------------- #
    tq = _pick_query_tile(Lq, Lk, H, vmem_cap=vmem_cap, emit_attn=return_attn)
    n_qt = Lq // tq

    attn_kernel = functools.partial(
        _attn_kernel, n_heads=H, d_k=Dk, d_v=Dv, compute_dtype=cd,
        emit_attn=return_attn, approx_recip=approx_recip)

    o_spec = pl.BlockSpec((1, tq, D), lambda bi, qt: (bi, qt, 0))
    if return_attn:
        # Emit attn directly in head-major [H, B, Lq, Lk] so the module layout
        # [H*B, Lq, Lk] is a free reshape (no post-kernel HBM transpose).
        out_shape = (jax.ShapeDtypeStruct((B, Lq, D), jnp.float32),
                     jax.ShapeDtypeStruct((H, B, Lq, Lk), jnp.float32))
        out_specs = [o_spec,
                     pl.BlockSpec((H, 1, tq, Lk), lambda bi, qt: (0, bi, qt, 0))]
    else:
        out_shape = jax.ShapeDtypeStruct((B, Lq, D), jnp.float32)
        out_specs = o_spec

    grid_spec = pltpu.PrefetchScalarGridSpec(
        num_scalar_prefetch=0,
        grid=(B, n_qt),
        in_specs=[
            pl.BlockSpec((1, tq, D),     lambda bi, qt: (bi, qt, 0)),    # q tile (f32)
            pl.BlockSpec((1, H, Lk, Dk), lambda bi, qt: (bi, 0, 0, 0)),  # projected K
            pl.BlockSpec((1, H, Lk, Dv), lambda bi, qt: (bi, 0, 0, 0)),  # projected V
            pl.BlockSpec((1, 1, Lk),     lambda bi, qt: (bi, 0, 0)),     # key mask
            _const_spec((D, H * Dk), buffered),                          # fused w_q
            _const_spec((H * Dv, D), buffered),                          # proj weight^T
            _const_spec((1, D), buffered),                               # proj bias
            _const_spec((1, D), buffered),                               # gamma
            _const_spec((1, D), buffered),                               # beta
        ],
        out_specs=out_specs,
        scratch_shapes=[pltpu.VMEM((tq, H * Dv), cd)],                   # per-head ctx
    )

    attn_est = (
        2 * tq * D * f32                                      # q tile
        + 2 * H * Lk * (Dk + Dv) * ics                        # projected K/V blocks
        + 2 * Lk * f32                                        # mask
        + wbuf * ((D * H * Dk + H * Dv * D) * ics + 3 * D * f32)
        + 2 * tq * D * f32                                    # ln output block
        + (2 * H * tq * Lk * f32 if return_attn else 0)       # attn output block
        + tq * H * Dv * ics                                   # ctx scratch
        + 4 * tq * Lk * f32                                   # live scores / exp
        + tq * H * Dk * ics)                                  # q_all

    return pl.pallas_call(
        attn_kernel,
        out_shape=out_shape,
        grid_spec=grid_spec,
        compiler_params=pltpu.CompilerParams(
            dimension_semantics=("parallel", "parallel"),
            vmem_limit_bytes=_vmem_limit(attn_est, vmem_cap)),
    )(q, k_proj, v_proj, mask3, wq_f, pw, pb, g, bta)


_BUFFERED_OK = [True]   # flipped to False once if pipeline_mode=Buffered(1) is rejected


def my_multihead_attention(q, k, v, k_mask, wq, wk, wv, proj_w, proj_b,
                           gamma, beta, *,
                           compute_dtype=jnp.bfloat16, return_attn=True):
    """q: [B, Lq, D]; k, v: [B, Lk, D]; k_mask: [B, Lk] (1 = attend, 0 = mask).

    wq/wk: [H, D, Dk]; wv: [H, D, Dv]; proj_w: [D, H*Dv] (torch Linear layout);
    proj_b, gamma, beta: [D].  Returns (layer_norm_out [B, Lq, D],
    attn [H*B, Lq, Lk]) (or just layer_norm_out if return_attn=False).
    """
    B, Lq, D = q.shape
    _, Lk, _ = k.shape
    H, _, Dk = wq.shape
    Dv = wv.shape[-1]
    cd = jnp.dtype(compute_dtype)
    approx_recip = cd != jnp.dtype(jnp.float32)

    # Fuse per-head weights across heads (wrapper-side, traced once under jit).
    wq_f = jnp.transpose(wq, (1, 0, 2)).reshape(D, H * Dk).astype(cd)   # [D, H*Dk]
    wk_f = jnp.transpose(wk, (1, 0, 2)).reshape(D, H * Dk).astype(cd)   # [D, H*Dk]
    wv_f = jnp.transpose(wv, (1, 0, 2)).reshape(D, H * Dv).astype(cd)   # [D, H*Dv]
    pw = jnp.transpose(proj_w).astype(cd)                               # [H*Dv, D]
    pb = proj_b.reshape(1, D).astype(jnp.float32)
    g = gamma.reshape(1, D).astype(jnp.float32)
    bta = beta.reshape(1, D).astype(jnp.float32)
    mask3 = k_mask.reshape(B, 1, Lk).astype(jnp.float32)
    # K/V are only consumed at compute_dtype -> cast in the wrapper (halves the
    # largest DMA); q stays f32 for the residual / LayerNorm path.
    q_f32 = q.astype(jnp.float32)
    k_cd = k.astype(cd)
    v_cd = v.astype(cd)

    vmem_cap = _vmem_capacity_bytes()
    run = functools.partial(
        _run, q_f32, k_cd, v_cd, mask3, wq_f, wk_f, wv_f, pw, pb, g, bta,
        H=H, Dk=Dk, Dv=Dv, cd=cd, return_attn=return_attn,
        approx_recip=approx_recip, vmem_cap=vmem_cap)

    use_buffered = _BUFFERED_OK[0] and hasattr(pl, "Buffered")
    try:
        outs = run(buffered=use_buffered)
    except Exception:
        if not use_buffered:
            raise
        _BUFFERED_OK[0] = False          # this JAX build rejects Buffered(1): fall back
        outs = run(buffered=False)

    if return_attn:
        ln_out, attn_hb = outs
        # Module layout [n_heads * batch, Lq, Lk], head-major: free reshape.
        return ln_out, attn_hb.reshape(H * B, Lq, Lk)
    return outs


# --------------------------------------------------------------------------- #
# Reference + test harness.                                                    #
# --------------------------------------------------------------------------- #
def _reference(q, k, v, mask, wq, wk, wv, proj_w, proj_b, gamma, beta):
    """Pure-JAX reference mirroring the PyTorch forward (dropout = identity)."""
    B, Lq, D = q.shape
    H = wq.shape[0]
    bias = (1.0 - mask[:, None, :]) * -10000.0
    outs, attns = [], []
    for h in range(H):
        qs, ks, vs = q @ wq[h], k @ wk[h], v @ wv[h]
        sc = jnp.einsum("bld,bmd->blm", qs, ks) / np.sqrt(wq.shape[-1]) + bias
        a = jax.nn.softmax(sc, axis=-1)
        attns.append(a)
        outs.append(jnp.einsum("blm,bmd->bld", a, vs))
    cat = jnp.concatenate(outs, axis=-1)                    # [B, Lq, H*Dv]
    proj = cat @ proj_w.T + proj_b
    y = q + proj
    mean = y.mean(-1, keepdims=True)
    std = jnp.sqrt(((y - mean) ** 2).sum(-1, keepdims=True) / (D - 1))
    ln = gamma * (y - mean) / (std + LN_EPS) + beta
    return ln, jnp.concatenate(attns, axis=0)               # [H*B, Lq, Lk]


if __name__ == "__main__":
    B, L, D, H = 2, 8, 32, 4          # d_model=32, d_k=d_v=32, n_heads=4
    Dk = Dv = 32
    key = jax.random.PRNGKey(0)
    k_q, k_k, k_v, k_wq, k_wk, k_wv, k_pw, k_pb = jax.random.split(key, 8)

    q = jax.random.normal(k_q, (B, L, D), dtype=jnp.float32)
    k = jax.random.normal(k_k, (B, L, D), dtype=jnp.float32)
    v = jax.random.normal(k_v, (B, L, D), dtype=jnp.float32)
    # key mask: 1 = attend, 0 = masked (ragged lengths)
    lengths = jnp.array([L, 5])
    mask = (jnp.arange(L)[None, :] < lengths[:, None]).astype(jnp.float32)

    xavier = np.float32(np.sqrt(2.0 / (D + Dk)))
    wq = jax.random.normal(k_wq, (H, D, Dk), dtype=jnp.float32) * xavier
    wk = jax.random.normal(k_wk, (H, D, Dk), dtype=jnp.float32) * xavier
    wv = jax.random.normal(k_wv, (H, D, Dv), dtype=jnp.float32) * xavier
    proj_w = jax.nn.initializers.orthogonal()(k_pw, (D, H * Dv), jnp.float32)
    bound = 1.0 / np.sqrt(H * Dv)
    proj_b = jax.random.uniform(k_pb, (D,), jnp.float32, -bound, bound)
    gamma = jnp.ones((D,), jnp.float32)
    beta = jnp.zeros((D,), jnp.float32)

    ref_out, ref_attn = _reference(q, k, v, mask, wq, wk, wv, proj_w, proj_b,
                                   gamma, beta)

    # f32 matmul path (exact reciprocals): tight structural check.
    out32, attn32 = my_multihead_attention(
        q, k, v, mask, wq, wk, wv, proj_w, proj_b, gamma, beta,
        compute_dtype=jnp.float32)
    out32, attn32 = jax.block_until_ready((out32, attn32))
    np.testing.assert_allclose(np.asarray(out32), np.asarray(ref_out),
                               rtol=2e-2, atol=2e-2)
    np.testing.assert_allclose(np.asarray(attn32), np.asarray(ref_attn),
                               rtol=2e-2, atol=2e-2)

    # bf16 matmul path (default / MXU-efficient): looser tolerance vs f32 ref.
    out_bf, attn_bf = my_multihead_attention(
        q, k, v, mask, wq, wk, wv, proj_w, proj_b, gamma, beta,
        compute_dtype=jnp.bfloat16)
    out_bf, attn_bf = jax.block_until_ready((out_bf, attn_bf))
    np.testing.assert_allclose(np.asarray(out_bf), np.asarray(ref_out),
                               rtol=8e-2, atol=8e-2)
    np.testing.assert_allclose(np.asarray(attn_bf), np.asarray(ref_attn),
                               rtol=8e-2, atol=8e-2)

    # Inference path without the O(H*B*L^2) attention-weights writeback.
    out_na = my_multihead_attention(
        q, k, v, mask, wq, wk, wv, proj_w, proj_b, gamma, beta,
        compute_dtype=jnp.bfloat16, return_attn=False)
    out_na = jax.block_until_ready(out_na)
    np.testing.assert_allclose(np.asarray(out_na), np.asarray(ref_out),
                               rtol=8e-2, atol=8e-2)

    print("KERNEL_OK")
</pallas_src>

<mosaic_0001>
module attributes {stable_mosaic.version = 11 : i64} {
  func.func @_kv_proj_kernel(%arg0: i32, %arg1: memref<1x8x32xf32, #tpu.memory_space<vmem>>, %arg2: memref<1x8x32xf32, #tpu.memory_space<vmem>>, %arg3: memref<32x128xf32, #tpu.memory_space<vmem>>, %arg4: memref<32x128xf32, #tpu.memory_space<vmem>>, %arg5: memref<1x4x8x32xf32, #tpu.memory_space<vmem>>, %arg6: memref<1x4x8x32xf32, #tpu.memory_space<vmem>>) attributes {dimension_semantics = [#tpu.dimension_semantics<parallel>], iteration_bounds = array<i64: 2>, scalar_prefetch = 0 : i64, scratch_operands = 0 : i64, tpu.core_type = #tpu.core_type<tc>, window_params = [{transform_indices = @transform_0, window_bounds = array<i64: 1, 8, 32>}, {transform_indices = @transform_1, window_bounds = array<i64: 1, 8, 32>}, {pipeline_mode = #tpu.pipeline_mode<synchronous>, transform_indices = @transform_2, window_bounds = array<i64: 32, 128>}, {pipeline_mode = #tpu.pipeline_mode<synchronous>, transform_indices = @transform_3, window_bounds = array<i64: 32, 128>}, {transform_indices = @transform_4, window_bounds = array<i64: 1, 4, 8, 32>}, {transform_indices = @transform_5, window_bounds = array<i64: 1, 4, 8, 32>}]} {
    %c0 = arith.constant 0 : index
    %c0_0 = arith.constant 0 : index
    %c0_1 = arith.constant 0 : index
    %0 = vector.load %arg1[%c0, %c0_0, %c0_1] : memref<1x8x32xf32, #tpu.memory_space<vmem>>, vector<1x8x32xf32>
    %1 = vector.shape_cast %0 : vector<1x8x32xf32> to vector<8x32xf32>
    %c0_2 = arith.constant 0 : index
    %c0_3 = arith.constant 0 : index
    %2 = vector.load %arg3[%c0_2, %c0_3] : memref<32x128xf32, #tpu.memory_space<vmem>>, vector<32x128xf32>
    %cst = arith.constant dense<0.000000e+00> : vector<8x128xf32>
    %3 = tpu.matmul %1, %2, %cst {dimension_numbers = #tpu.dot_dimension_numbers<[1], [0], [0], [1], [0, 0, 1, 1], [], []>} : vector<8x32xf32>, vector<32x128xf32>, vector<8x128xf32> -> vector<8x128xf32>
    %c0_4 = arith.constant 0 : index
    %c0_5 = arith.constant 0 : index
    %c0_6 = arith.constant 0 : index
    %4 = vector.load %arg2[%c0_4, %c0_5, %c0_6] : memref<1x8x32xf32, #tpu.memory_space<vmem>>, vector<1x8x32xf32>
    %5 = vector.shape_cast %4 : vector<1x8x32xf32> to vector<8x32xf32>
    %c0_7 = arith.constant 0 : index
    %c0_8 = arith.constant 0 : index
    %6 = vector.load %arg4[%c0_7, %c0_8] : memref<32x128xf32, #tpu.memory_space<vmem>>, vector<32x128xf32>
    %cst_9 = arith.constant dense<0.000000e+00> : vector<8x128xf32>
    %7 = tpu.matmul %5, %6, %cst_9 {dimension_numbers = #tpu.dot_dimension_numbers<[1], [0], [0], [1], [0, 0, 1, 1], [], []>} : vector<8x32xf32>, vector<32x128xf32>, vector<8x128xf32> -> vector<8x128xf32>
    %8 = vector.extract_strided_slice %3 {offsets = [0, 0], sizes = [8, 32], strides = [1, 1]} : vector<8x128xf32> to vector<8x32xf32>
    %c0_10 = arith.constant 0 : index
    %c0_11 = arith.constant 0 : index
    %c0_12 = arith.constant 0 : index
    %c0_13 = arith.constant 0 : index
    %9 = vector.load %arg5[%c0_10, %c0_11, %c0_12, %c0_13] : memref<1x4x8x32xf32, #tpu.memory_space<vmem>>, vector<1x1x8x32xf32>
    %10 = vector.shape_cast %9 : vector<1x1x8x32xf32> to vector<8x32xf32>
    %11 = vector.shape_cast %8 : vector<8x32xf32> to vector<1x1x8x32xf32>
    tpu.vector_store %arg5[%c0_10, %c0_11, %c0_12, %c0_13], %11 {strides = array<i32>} : memref<1x4x8x32xf32, #tpu.memory_space<vmem>>, vector<1x1x8x32xf32>,
    %12 = vector.extract_strided_slice %7 {offsets = [0, 0], sizes = [8, 32], strides = [1, 1]} : vector<8x128xf32> to vector<8x32xf32>
    %c0_14 = arith.constant 0 : index
    %c0_15 = arith.constant 0 : index
    %c0_16 = arith.constant 0 : index
    %c0_17 = arith.constant 0 : index
    %13 = vector.load %arg6[%c0_14, %c0_15, %c0_16, %c0_17] : memref<1x4x8x32xf32, #tpu.memory_space<vmem>>, vector<1x1x8x32xf32>
    %14 = vector.shape_cast %13 : vector<1x1x8x32xf32> to vector<8x32xf32>
    %15 = vector.shape_cast %12 : vector<8x32xf32> to vector<1x1x8x32xf32>
    tpu.vector_store %arg6[%c0_14, %c0_15, %c0_16, %c0_17], %15 {strides = array<i32>} : memref<1x4x8x32xf32, #tpu.memory_space<vmem>>, vector<1x1x8x32xf32>,
    %16 = vector.extract_strided_slice %3 {offsets = [0, 32], sizes = [8, 32], strides = [1, 1]} : vector<8x128xf32> to vector<8x32xf32>
    %c0_18 = arith.constant 0 : index
    %c1 = arith.constant 1 : index
    %c0_19 = arith.constant 0 : index
    %c0_20 = arith.constant 0 : index
    %17 = vector.load %arg5[%c0_18, %c1, %c0_19, %c0_20] : memref<1x4x8x32xf32, #tpu.memory_space<vmem>>, vector<1x1x8x32xf32>
    %18 = vector.shape_cast %17 : vector<1x1x8x32xf32> to vector<8x32xf32>
    %19 = vector.shape_cast %16 : vector<8x32xf32> to vector<1x1x8x32xf32>
    tpu.vector_store %arg5[%c0_18, %c1, %c0_19, %c0_20], %19 {strides = array<i32>} : memref<1x4x8x32xf32, #tpu.memory_space<vmem>>, vector<1x1x8x32xf32>,
    %20 = vector.extract_strided_slice %7 {offsets = [0, 32], sizes = [8, 32], strides = [1, 1]} : vector<8x128xf32> to vector<8x32xf32>
    %c0_21 = arith.constant 0 : index
    %c1_22 = arith.constant 1 : index
    %c0_23 = arith.constant 0 : index
    %c0_24 = arith.constant 0 : index
    %21 = vector.load %arg6[%c0_21, %c1_22, %c0_23, %c0_24] : memref<1x4x8x32xf32, #tpu.memory_space<vmem>>, vector<1x1x8x32xf32>
    %22 = vector.shape_cast %21 : vector<1x1x8x32xf32> to vector<8x32xf32>
    %23 = vector.shape_cast %20 : vector<8x32xf32> to vector<1x1x8x32xf32>
    tpu.vector_store %arg6[%c0_21, %c1_22, %c0_23, %c0_24], %23 {strides = array<i32>} : memref<1x4x8x32xf32, #tpu.memory_space<vmem>>, vector<1x1x8x32xf32>,
    %24 = vector.extract_strided_slice %3 {offsets = [0, 64], sizes = [8, 32], strides = [1, 1]} : vector<8x128xf32> to vector<8x32xf32>
    %c0_25 = arith.constant 0 : index
    %c2 = arith.constant 2 : index
    %c0_26 = arith.constant 0 : index
    %c0_27 = arith.constant 0 : index
    %25 = vector.load %arg5[%c0_25, %c2, %c0_26, %c0_27] : memref<1x4x8x32xf32, #tpu.memory_space<vmem>>, vector<1x1x8x32xf32>
    %26 = vector.shape_cast %25 : vector<1x1x8x32xf32> to vector<8x32xf32>
    %27 = vector.shape_cast %24 : vector<8x32xf32> to vector<1x1x8x32xf32>
    tpu.vector_store %arg5[%c0_25, %c2, %c0_26, %c0_27], %27 {strides = array<i32>} : memref<1x4x8x32xf32, #tpu.memory_space<vmem>>, vector<1x1x8x32xf32>,
    %28 = vector.extract_strided_slice %7 {offsets = [0, 64], sizes = [8, 32], strides = [1, 1]} : vector<8x128xf32> to vector<8x32xf32>
    %c0_28 = arith.constant 0 : index
    %c2_29 = arith.constant 2 : index
    %c0_30 = arith.constant 0 : index
    %c0_31 = arith.constant 0 : index
    %29 = vector.load %arg6[%c0_28, %c2_29, %c0_30, %c0_31] : memref<1x4x8x32xf32, #tpu.memory_space<vmem>>, vector<1x1x8x32xf32>
    %30 = vector.shape_cast %29 : vector<1x1x8x32xf32> to vector<8x32xf32>
    %31 = vector.shape_cast %28 : vector<8x32xf32> to vector<1x1x8x32xf32>
    tpu.vector_store %arg6[%c0_28, %c2_29, %c0_30, %c0_31], %31 {strides = array<i32>} : memref<1x4x8x32xf32, #tpu.memory_space<vmem>>, vector<1x1x8x32xf32>,
    %32 = vector.extract_strided_slice %3 {offsets = [0, 96], sizes = [8, 32], strides = [1, 1]} : vector<8x128xf32> to vector<8x32xf32>
    %c0_32 = arith.constant 0 : index
    %c3 = arith.constant 3 : index
    %c0_33 = arith.constant 0 : index
    %c0_34 = arith.constant 0 : index
    %33 = vector.load %arg5[%c0_32, %c3, %c0_33, %c0_34] : memref<1x4x8x32xf32, #tpu.memory_space<vmem>>, vector<1x1x8x32xf32>
    %34 = vector.shape_cast %33 : vector<1x1x8x32xf32> to vector<8x32xf32>
    %35 = vector.shape_cast %32 : vector<8x32xf32> to vector<1x1x8x32xf32>
    tpu.vector_store %arg5[%c0_32, %c3, %c0_33, %c0_34], %35 {strides = array<i32>} : memref<1x4x8x32xf32, #tpu.memory_space<vmem>>, vector<1x1x8x32xf32>,
    %36 = vector.extract_strided_slice %7 {offsets = [0, 96], sizes = [8, 32], strides = [1, 1]} : vector<8x128xf32> to vector<8x32xf32>
    %c0_35 = arith.constant 0 : index
    %c3_36 = arith.constant 3 : index
    %c0_37 = arith.constant 0 : index
    %c0_38 = arith.constant 0 : index
    %37 = vector.load %arg6[%c0_35, %c3_36, %c0_37, %c0_38] : memref<1x4x8x32xf32, #tpu.memory_space<vmem>>, vector<1x1x8x32xf32>
    %38 = vector.shape_cast %37 : vector<1x1x8x32xf32> to vector<8x32xf32>
    %39 = vector.shape_cast %36 : vector<8x32xf32> to vector<1x1x8x32xf32>
    tpu.vector_store %arg6[%c0_35, %c3_36, %c0_37, %c0_38], %39 {strides = array<i32>} : memref<1x4x8x32xf32, #tpu.memory_space<vmem>>, vector<1x1x8x32xf32>,
    return
  }
  func.func @transform_0(%arg0: i32) -> (i32, i32, i32) {
    %c0_i32 = arith.constant 0 : i32
    %c0_i32_0 = arith.constant 0 : i32
    %c0_i32_1 = arith.constant 0 : i32
    return %arg0, %c0_i32, %c0_i32_0 : i32, i32, i32
  }
  func.func @transform_1(%arg0: i32) -> (i32, i32, i32) {
    %c0_i32 = arith.constant 0 : i32
    %c0_i32_0 = arith.constant 0 : i32
    %c0_i32_1 = arith.constant 0 : i32
    return %arg0, %c0_i32, %c0_i32_0 : i32, i32, i32
  }
  func.func @transform_2(%arg0: i32) -> (i32, i32) {
    %c0_i32 = arith.constant 0 : i32
    %c0_i32_0 = arith.constant 0 : i32
    %c0_i32_1 = arith.constant 0 : i32
    return %c0_i32, %c0_i32_0 : i32, i32
  }
  func.func @transform_3(%arg0: i32) -> (i32, i32) {
    %c0_i32 = arith.constant 0 : i32
    %c0_i32_0 = arith.constant 0 : i32
    %c0_i32_1 = arith.constant 0 : i32
    return %c0_i32, %c0_i32_0 : i32, i32
  }
  func.func @transform_4(%arg0: i32) -> (i32, i32, i32, i32) {
    %c0_i32 = arith.constant 0 : i32
    %c0_i32_0 = arith.constant 0 : i32
    %c0_i32_1 = arith.constant 0 : i32
    %c0_i32_2 = arith.constant 0 : i32
    return %arg0, %c0_i32, %c0_i32_0, %c0_i32_1 : i32, i32, i32, i32
  }
  func.func @transform_5(%arg0: i32) -> (i32, i32, i32, i32) {
    %c0_i32 = arith.constant 0 : i32
    %c0_i32_0 = arith.constant 0 : i32
    %c0_i32_1 = arith.constant 0 : i32
    %c0_i32_2 = arith.constant 0 : i32
    return %arg0, %c0_i32, %c0_i32_0, %c0_i32_1 : i32, i32, i32, i32
  }
}

module attributes {stable_mosaic.version = 11 : i64} {
  func.func @_kv_proj_kernel(%arg0: i32, %arg1: memref<1x8x32xf32, #tpu.memory_space<vmem>>, %arg2: memref<1x8x32xf32, #tpu.memory_space<vmem>>, %arg3: memref<32x128xf32, #tpu.memory_space<vmem>>, %arg4: memref<32x128xf32, #tpu.memory_space<vmem>>, %arg5: memref<1x4x8x32xf32, #tpu.memory_space<vmem>>, %arg6: memref<1x4x8x32xf32, #tpu.memory_space<vmem>>) attributes {dimension_semantics = [#tpu.dimension_semantics<parallel>], iteration_bounds = array<i64: 2>, scalar_prefetch = 0 : i64, scratch_operands = 0 : i64, tpu.core_type = #tpu.core_type<tc>, window_params = [{transform_indices = @transform_0, window_bounds = array<i64: 1, 8, 32>}, {transform_indices = @transform_1, window_bounds = array<i64: 1, 8, 32>}, {pipeline_mode = #tpu.pipeline_mode<synchronous>, transform_indices = @transform_2, window_bounds = array<i64: 32, 128>}, {pipeline_mode = #tpu.pipeline_mode<synchronous>, transform_indices = @transform_3, window_bounds = array<i64: 32, 128>}, {transform_indices = @transform_4, window_bounds = array<i64: 1, 4, 8, 32>}, {transform_indices = @transform_5, window_bounds = array<i64: 1, 4, 8, 32>}]} {
    %c0 = arith.constant 0 : index
    %c0_0 = arith.constant 0 : index
    %c0_1 = arith.constant 0 : index
    %0 = vector.load %arg1[%c0, %c0_0, %c0_1] : memref<1x8x32xf32, #tpu.memory_space<vmem>>, vector<1x8x32xf32>
    %1 = vector.shape_cast %0 : vector<1x8x32xf32> to vector<8x32xf32>
    %c0_2 = arith.constant 0 : index
    %c0_3 = arith.constant 0 : index
    %2 = vector.load %arg3[%c0_2, %c0_3] : memref<32x128xf32, #tpu.memory_space<vmem>>, vector<32x128xf32>
    %cst = arith.constant dense<0.000000e+00> : vector<8x128xf32>
    %3 = tpu.matmul %1, %2, %cst {dimension_numbers = #tpu.dot_dimension_numbers<[1], [0], [0], [1], [0, 0, 1, 1], [], []>} : vector<8x32xf32>, vector<32x128xf32>, vector<8x128xf32> -> vector<8x128xf32>
    %c0_4 = arith.constant 0 : index
    %c0_5 = arith.constant 0 : index
    %c0_6 = arith.constant 0 : index
    %4 = vector.load %arg2[%c0_4, %c0_5, %c0_6] : memref<1x8x32xf32, #tpu.memory_space<vmem>>, vector<1x8x32xf32>
    %5 = vector.shape_cast %4 : vector<1x8x32xf32> to vector<8x32xf32>
    %c0_7 = arith.constant 0 : index
    %c0_8 = arith.constant 0 : index
    %6 = vector.load %arg4[%c0_7, %c0_8] : memref<32x128xf32, #tpu.memory_space<vmem>>, vector<32x128xf32>
    %cst_9 = arith.constant dense<0.000000e+00> : vector<8x128xf32>
    %7 = tpu.matmul %5, %6, %cst_9 {dimension_numbers = #tpu.dot_dimension_numbers<[1], [0], [0], [1], [0, 0, 1, 1], [], []>} : vector<8x32xf32>, vector<32x128xf32>, vector<8x128xf32> -> vector<8x128xf32>
    %8 = vector.extract_strided_slice %3 {offsets = [0, 0], sizes = [8, 32], strides = [1, 1]} : vector<8x128xf32> to vector<8x32xf32>
    %c0_10 = arith.constant 0 : index
    %c0_11 = arith.constant 0 : index
    %c0_12 = arith.constant 0 : index
    %c0_13 = arith.constant 0 : index
    %9 = vector.load %arg5[%c0_10, %c0_11, %c0_12, %c0_13] : memref<1x4x8x32xf32, #tpu.memory_space<vmem>>, vector<1x1x8x32xf32>
    %10 = vector.shape_cast %9 : vector<1x1x8x32xf32> to vector<8x32xf32>
    %11 = vector.shape_cast %8 : vector<8x32xf32> to vector<1x1x8x32xf32>
    tpu.vector_store %arg5[%c0_10, %c0_11, %c0_12, %c0_13], %11 {strides = array<i32>} : memref<1x4x8x32xf32, #tpu.memory_space<vmem>>, vector<1x1x8x32xf32>,
    %12 = vector.extract_strided_slice %7 {offsets = [0, 0], sizes = [8, 32], strides = [1, 1]} : vector<8x128xf32> to vector<8x32xf32>
    %c0_14 = arith.constant 0 : index
    %c0_15 = arith.constant 0 : index
    %c0_16 = arith.constant 0 : index
    %c0_17 = arith.constant 0 : index
    %13 = vector.load %arg6[%c0_14, %c0_15, %c0_16, %c0_17] : memref<1x4x8x32xf32, #tpu.memory_space<vmem>>, vector<1x1x8x32xf32>
    %14 = vector.shape_cast %13 : vector<1x1x8x32xf32> to vector<8x32xf32>
    %15 = vector.shape_cast %12 : vector<8x32xf32> to vector<1x1x8x32xf32>
    tpu.vector_store %arg6[%c0_14, %c0_15, %c0_16, %c0_17], %15 {strides = array<i32>} : memref<1x4x8x32xf32, #tpu.memory_space<vmem>>, vector<1x1x8x32xf32>,
    %16 = vector.extract_strided_slice %3 {offsets = [0, 32], sizes = [8, 32], strides = [1, 1]} : vector<8x128xf32> to vector<8x32xf32>
    %c0_18 = arith.constant 0 : index
    %c1 = arith.constant 1 : index
    %c0_19 = arith.constant 0 : index
    %c0_20 = arith.constant 0 : index
    %17 = vector.load %arg5[%c0_18, %c1, %c0_19, %c0_20] : memref<1x4x8x32xf32, #tpu.memory_space<vmem>>, vector<1x1x8x32xf32>
    %18 = vector.shape_cast %17 : vector<1x1x8x32xf32> to vector<8x32xf32>
    %19 = vector.shape_cast %16 : vector<8x32xf32> to vector<1x1x8x32xf32>
    tpu.vector_store %arg5[%c0_18, %c1, %c0_19, %c0_20], %19 {strides = array<i32>} : memref<1x4x8x32xf32, #tpu.memory_space<vmem>>, vector<1x1x8x32xf32>,
    %20 = vector.extract_strided_slice %7 {offsets = [0, 32], sizes = [8, 32], strides = [1, 1]} : vector<8x128xf32> to vector<8x32xf32>
    %c0_21 = arith.constant 0 : index
    %c1_22 = arith.constant 1 : index
    %c0_23 = arith.constant 0 : index
    %c0_24 = arith.constant 0 : index
    %21 = vector.load %arg6[%c0_21, %c1_22, %c0_23, %c0_24] : memref<1x4x8x32xf32, #tpu.memory_space<vmem>>, vector<1x1x8x32xf32>
    %22 = vector.shape_cast %21 : vector<1x1x8x32xf32> to vector<8x32xf32>
    %23 = vector.shape_cast %20 : vector<8x32xf32> to vector<1x1x8x32xf32>
    tpu.vector_store %arg6[%c0_21, %c1_22, %c0_23, %c0_24], %23 {strides = array<i32>} : memref<1x4x8x32xf32, #tpu.memory_space<vmem>>, vector<1x1x8x32xf32>,
    %24 = vector.extract_strided_slice %3 {offsets = [0, 64], sizes = [8, 32], strides = [1, 1]} : vector<8x128xf32> to vector<8x32xf32>
    %c0_25 = arith.constant 0 : index
    %c2 = arith.constant 2 : index
    %c0_26 = arith.constant 0 : index
    %c0_27 = arith.constant 0 : index
    %25 = vector.load %arg5[%c0_25, %c2, %c0_26, %c0_27] : memref<1x4x8x32xf32, #tpu.memory_space<vmem>>, vector<1x1x8x32xf32>
    %26 = vector.shape_cast %25 : vector<1x1x8x32xf32> to vector<8x32xf32>
    %27 = vector.shape_cast %24 : vector<8x32xf32> to vector<1x1x8x32xf32>
    tpu.vector_store %arg5[%c0_25, %c2, %c0_26, %c0_27], %27 {strides = array<i32>} : memref<1x4x8x32xf32, #tpu.memory_space<vmem>>, vector<1x1x8x32xf32>,
    %28 = vector.extract_strided_slice %7 {offsets = [0, 64], sizes = [8, 32], strides = [1, 1]} : vector<8x128xf32> to vector<8x32xf32>
    %c0_28 = arith.constant 0 : index
    %c2_29 = arith.constant 2 : index
    %c0_30 = arith.constant 0 : index
    %c0_31 = arith.constant 0 : index
    %29 = vector.load %arg6[%c0_28, %c2_29, %c0_30, %c0_31] : memref<1x4x8x32xf32, #tpu.memory_space<vmem>>, vector<1x1x8x32xf32>
    %30 = vector.shape_cast %29 : vector<1x1x8x32xf32> to vector<8x32xf32>
    %31 = vector.shape_cast %28 : vector<8x32xf32> to vector<1x1x8x32xf32>
    tpu.vector_store %arg6[%c0_28, %c2_29, %c0_30, %c0_31], %31 {strides = array<i32>} : memref<1x4x8x32xf32, #tpu.memory_space<vmem>>, vector<1x1x8x32xf32>,
    %32 = vector.extract_strided_slice %3 {offsets = [0, 96], sizes = [8, 32], strides = [1, 1]} : vector<8x128xf32> to vector<8x32xf32>
    %c0_32 = arith.constant 0 : index
    %c3 = arith.constant 3 : index
    %c0_33 = arith.constant 0 : index
    %c0_34 = arith.constant 0 : index
    %33 = vector.load %arg5[%c0_32, %c3, %c0_33, %c0_34] : memref<1x4x8x32xf32, #tpu.memory_space<vmem>>, vector<1x1x8x32xf32>
    %34 = vector.shape_cast %33 : vector<1x1x8x32xf32> to vector<8x32xf32>
    %35 = vector.shape_cast %32 : vector<8x32xf32> to vector<1x1x8x32xf32>
    tpu.vector_store %arg5[%c0_32, %c3, %c0_33, %c0_34], %35 {strides = array<i32>} : memref<1x4x8x32xf32, #tpu.memory_space<vmem>>, vector<1x1x8x32xf32>,
    %36 = vector.extract_strided_slice %7 {offsets = [0, 96], sizes = [8, 32], strides = [1, 1]} : vector<8x128xf32> to vector<8x32xf32>
    %c0_35 = arith.constant 0 : index
    %c3_36 = arith.constant 3 : index
    %c0_37 = arith.constant 0 : index
    %c0_38 = arith.constant 0 : index
    %37 = vector.load %arg6[%c0_35, %c3_36, %c0_37, %c0_38] : memref<1x4x8x32xf32, #tpu.memory_space<vmem>>, vector<1x1x8x32xf32>
    %38 = vector.shape_cast %37 : vector<1x1x8x32xf32> to vector<8x32xf32>
    %39 = vector.shape_cast %36 : vector<8x32xf32> to vector<1x1x8x32xf32>
    tpu.vector_store %arg6[%c0_35, %c3_36, %c0_37, %c0_38], %39 {strides = array<i32>} : memref<1x4x8x32xf32, #tpu.memory_space<vmem>>, vector<1x1x8x32xf32>,
    return
  }
  func.func @transform_0(%arg0: i32) -> (i32, i32, i32) {
    %c0_i32 = arith.constant 0 : i32
    %c0_i32_0 = arith.constant 0 : i32
    %c0_i32_1 = arith.constant 0 : i32
    return %arg0, %c0_i32, %c0_i32_0 : i32, i32, i32
  }
  func.func @transform_1(%arg0: i32) -> (i32, i32, i32) {
    %c0_i32 = arith.constant 0 : i32
    %c0_i32_0 = arith.constant 0 : i32
    %c0_i32_1 = arith.constant 0 : i32
    return %arg0, %c0_i32, %c0_i32_0 : i32, i32, i32
  }
  func.func @transform_2(%arg0: i32) -> (i32, i32) {
    %c0_i32 = arith.constant 0 : i32
    %c0_i32_0 = arith.constant 0 : i32
    %c0_i32_1 = arith.constant 0 : i32
    return %c0_i32, %c0_i32_0 : i32, i32
  }
  func.func @transform_3(%arg0: i32) -> (i32, i32) {
    %c0_i32 = arith.constant 0 : i32
    %c0_i32_0 = arith.constant 0 : i32
    %c0_i32_1 = arith.constant 0 : i32
    return %c0_i32, %c0_i32_0 : i32, i32
  }
  func.func @transform_4(%arg0: i32) -> (i32, i32, i32, i32) {
    %c0_i32 = arith.constant 0 : i32
    %c0_i32_0 = arith.constant 0 : i32
    %c0_i32_1 = arith.constant 0 : i32
    %c0_i32_2 = arith.constant 0 : i32
    return %arg0, %c0_i32, %c0_i32_0, %c0_i32_1 : i32, i32, i32, i32
  }
  func.func @transform_5(%arg0: i32) -> (i32, i32, i32, i32) {
    %c0_i32 = arith.constant 0 : i32
    %c0_i32_0 = arith.constant 0 : i32
    %c0_i32_1 = arith.constant 0 : i32
    %c0_i32_2 = arith.constant 0 : i32
    return %arg0, %c0_i32, %c0_i32_0, %c0_i32_1 : i32, i32, i32, i32
  }
}

</mosaic_0001>

<bundles_post_ra>
// kernel: tpu_custom_call.1
= control target key start
LH: loop header
LB: loop body
LE: loop exit
PB: predicated region body
PF: predicated region fallthrough
CT: control target
= control target key end

     0   :  { %s1461_s0 = inlined_call_operand.hbm [shape: f32[2,8,32], index: 0, kind: input, shape index: {}]   ;;  %s1462_s1 = inlined_call_operand.hbm [shape: f32[2,8,32], index: 1, kind: input, shape index: {}]   ;;  %s1463_s2 = inlined_call_operand.hbm [shape: f32[32,128], index: 2, kind: input, shape index: {}]   ;;  %s1464_s3 = inlined_call_operand.hbm [shape: f32[32,128], index: 3, kind: input, shape index: {}]   ;;  %s1465_s4 = inlined_call_operand.hbm [shape: f32[2,4,8,32], index: 4, kind: output, shape index: {0}]   ;;  %s1466_s5 = inlined_call_operand.hbm [shape: f32[2,4,8,32], index: 5, kind: output, shape index: {1}]  }
   0x1   :  { %1471 = sst [smem:[#allocation19_spill]] %s1463_s2 }
   0x2   :  { %1472 = sst [smem:[#allocation20_spill]] %s1464_s3 }
   0x3   :  { %11 = vsyncpa [#allocation3], 0 }
   0x4   :  { %13 = vsyncpa [#allocation3 + $0x1], 0 }
   0x5   :  { %14 = vsyncpa [#allocation6], 0 }
   0x6   :  { %16 = vsyncpa [#allocation6 + $0x1], 0 }
   0x7   :  { %17 = vsyncpa [#allocation9], 0 }
   0x8   :  { %18 = vsyncpa [#allocation4], 0 }
   0x9   :  { %20 = vsyncpa [#allocation4 + $0x1], 0 }
   0xa   :  { %21 = vsyncpa [#allocation12], 0 }
   0xb   :  { %23 = vsyncpa [#allocation12 + $0x1], 0  ;;  %s1129_s18 = smov 0   ;;  %s1131_s19 = smov 0  }
   0xc   :  { %s1133_s20 = smov 0   ;;  %s1135_s21 = smov 0  }
   0xd LB: > { %s1150_s22 = sadd.s32 4294967295, %s1081_s21   ;;  %s690_s23 = sadd.s32 4294967294, %s1081_s21   ;;  %s1081_s21 = sphi %s1135_s21, %s1494_s21   ;;  %s1077_s20 = sphi %s1133_s20, %s1493_s20   ;;  %s1073_s19 = sphi %s1131_s19, %s1492_s19   ;;  %s1069_s18 = sphi %s1129_s18, %s1491_s18  }
   0xe   : > { %p49_p0 = scmp.ne.s32.totalorder %s1073_s19, %s1069_s18  ;;  %p1467_p1 = scmp.eq.s32.totalorder %s1150_s22, 0 }
   0xf   : > { %p147_p3 = scmp.eq.s32.totalorder %s690_s23, 1  ;;  %p691_p5 = scmp.ge.s32.totalorder %s1081_s21, 1 }
  0x10   : > { %p1159_p4 = por %p1467_p1, %p49_p0  ;;  %p180_p7 = scmp.lt.s32.totalorder %s1081_s21, 3 }
  0x11   : > { %p1164_p6 = por %p147_p3, %p49_p0  ;;  %s1083_s27 = smov [#allocation7]  }
  0x12   : > { %s1473_s24 = scalar_select %p1159_p4, 1, 0 }
  0x13   : > { %s1474_s25 = scalar_select %p1164_p6, 1, 0 }
  0x14   : > { %p1169_p8 = pnand %p691_p5, %p180_p7  ;;  %s192_s28 = sshll.u32 %s1083_s27, 4  ;;  %s1173_s28 = int_to_ptr.vmem [resolvable:$true] %s192_s28 }
  0x15   : > { %s1084_s30 = smov [#allocation8]   ;;  %s1477_s2 = sld [smem:[#allocation19_spill]] }
  0x16   : > { %s1475_s26 = scalar_select %p1169_p8, 1, 0 }
  0x17   : > { %p784_p9 = pneg %p1169_p8  ;;  %s205_s6 = sshll.u32 %s1084_s30, 4  ;;  %s1184_s6 = int_to_ptr.vmem [resolvable:$true] %s205_s6 }
  0x19   : > { %p1180_p11 = pnand %p784_p9, %p1467_p1 }
  0x1b   : > { %s855_s9 = scalar_lea.hbm %s1477_s2, 512  ;;  %p857_p13 = pneg %p1180_p11 }
  0x1c   : > { %p856_p12 = scmp.ne.s32.totalorder %s1477_s2, %s855_s9  ;;  %p862_p5 = scmp.lt.u32.totalorder %s855_s9, %s1477_s2 }
  0x1e   : > { %p858_p0 = pnand %p857_p13, %p856_p12 }
  0x20   : > { %p859_p3 = pneg %p858_p0 }
  0x22   : > { %p864_p7 = pnand %p862_p5, %p859_p3 }
  0x24   : > { %867 = shalt.err (!%p864_p7)
}
  0x25   : > { %s868_s14 = scalar_lea.vmem %s1173_s28, 512  ;;  %p876_p2 = scmp.lt.s32.totalorder %s1173_s28, %s1173_s28 }
  0x26   : > { %p869_p9 = scmp.ne.s32.totalorder %s1173_s28, %s868_s14  ;;  %p877_p12 = scmp.lt.s32.totalorder %s868_s14, %s868_s14 }
  0x28   : > { %p871_p10 = pnand %p869_p9, %p857_p13  ;;  %p878_p0 = por %p877_p12, %p876_p2 }
  0x2a   : > { %p872_p1 = pneg %p871_p10 }
  0x2c   : > { %p879_p6 = pnand %p878_p0, %p872_p1 }
  0x2e   : > { %882 = shalt.err (!%p879_p6)
}
  0x2f   : > { %s1085_s15 = smov 128   ;;  %s1086_s16 = smov 8  }
  0x30   : > { %787 = dma.hbm_to_vmem [thread:$0]  (!%p1180_p11), %s1477_s2, 512, %s1173_s28, [#allocation6], %s1085_s15, %s1085_s15, %s1086_s16  }
  0x31   : > { %s1478_s3 = sld [smem:[#allocation20_spill]] }
  0x37   : > { %s883_s7 = scalar_lea.hbm %s1478_s3, 512 }
  0x38   : > { %p884_p2 = scmp.ne.s32.totalorder %s1478_s3, %s883_s7  ;;  %p890_p10 = scmp.lt.u32.totalorder %s883_s7, %s1478_s3 }
  0x3a   : > { %p886_p1 = pnand %p884_p2, %p857_p13 }
  0x3c   : > { %p887_p6 = pneg %p886_p1 }
  0x3e   : > { %p892_p3 = pnand %p890_p10, %p887_p6 }
  0x40   : > { %895 = shalt.err (!%p892_p3)
}
  0x41   : > { %s896_s28 = scalar_lea.vmem %s1184_s6, 512  ;;  %p904_p12 = scmp.lt.s32.totalorder %s1184_s6, %s1184_s6 }
  0x42   : > { %p897_p5 = scmp.ne.s32.totalorder %s1184_s6, %s896_s28  ;;  %p905_p0 = scmp.lt.s32.totalorder %s896_s28, %s896_s28 }
  0x44   : > { %p899_p7 = pnand %p897_p5, %p857_p13  ;;  %p906_p2 = por %p905_p0, %p904_p12 }
  0x46   : > { %p900_p9 = pneg %p899_p7 }
  0x48   : > { %p907_p1 = pnand %p906_p2, %p900_p9 }
  0x4a   : > { %910 = shalt.err (!%p907_p1)
}
  0x4b   : > { %790 = dma.hbm_to_vmem [thread:$0]  (!%p1180_p11), %s1478_s3, 512, %s1184_s6, [#allocation9], %s1085_s15, %s1085_s15, %s1086_s16  }
  0x4c   : > { %s1239_s14 = sadd.s32 1, %s1081_s21   ;;  %s36_s29 = sadd.s32 1, %s1077_s20 }
  0x4d   : > { %s33_s17 = ssub.s32 %s1081_s21, %s1239_s14  ;;  %p43_p13 = scmp.ne.s32.totalorder %s1077_s20, %s1073_s19 }
  0x4e   : > { %p34_p6 = scmp.eq.s32.totalorder %s33_s17, 0  ;;  %p44_p10 = scmp.eq.s32.totalorder %s1081_s21, 0 }
  0x4f   : > { %p1479_p3 = scmp.eq.s32.totalorder %s1150_s22, 1  ;;  %p807_p7 = scmp.lt.s32.totalorder %s1081_s21, 2 }
  0x50   : > { %s1255_s27 = scalar_select %p34_p6, %s1077_s20, %s36_s29  }
  0x51   : > { %p1249_p5 = por %p1479_p3, %p43_p13  ;;  %p45_p9 = por %p44_p10, %p43_p13 }
  0x52   : > { %s219_s30 = sand.u32 1, %s1077_s20   ;;  %s696_s15 = sshll.u32 %s1081_s21, 7 }
  0x53   : > { %s1480_s23 = scalar_select %p1249_p5, 1, 0 }
  0x54   : > { %s1258_s6 = sshll.u32 %s219_s30, 3  ;;  %s1264_s8 = scalar_lea.hbm %s1461_s0, %s696_s15 }
  0x55   : > { %s223_s9 = scalar_lea.vmem [#allocation2], %s1258_s6  ;;  %p1269_p11 = pnand %p807_p7, %p45_p9 }
  0x56   : > { %s230_s10 = sshll.u32 %s223_s9, 4  ;;  %s1276_s13 = scalar_lea.hbm %s1462_s1, %s696_s15  ;;  %s1267_s10 = int_to_ptr.vmem [resolvable:$true] %s230_s10 }
  0x57   : > { %s237_s29 = sand.u32 1, %s1081_s21   ;;  %s220_s17 = scalar_lea.sflag [#allocation3], %s219_s30 }
  0x58   : > { %s911_s16 = scalar_lea.hbm %s1264_s8, 128  ;;  %p913_p0 = pneg %p1269_p11 }
  0x59   : > { %p912_p12 = scmp.ne.s32.totalorder %s1264_s8, %s911_s16  ;;  %s916_s2 = scalar_lea.hbm %s1461_s0, 256 }
  0x5a   : > { %p917_p13 = scmp.lt.u32.totalorder %s1264_s8, %s1461_s0  ;;  %p918_p6 = scmp.lt.u32.totalorder %s916_s2, %s911_s16 }
  0x5b   : > { %p914_p2 = pnand %p913_p0, %p912_p12  ;;  %p920_p3 = scmp.lt.u32.totalorder %s911_s16, %s1264_s8 }
  0x5c   : > { %p919_p10 = por %p918_p6, %p917_p13 }
  0x5d   : > { %p915_p1 = pneg %p914_p2 }
  0x5e   : > { %p921_p7 = por %p920_p3, %p919_p10 }
  0x60   : > { %p922_p9 = pnand %p921_p7, %p915_p1 }
  0x62   : > { %925 = shalt.err (!%p922_p9)
}
  0x63   : > { %s926_s30 = scalar_lea.vmem %s1267_s10, 128  ;;  %s1087_s15 = smov [#allocation2]  }
  0x64   : > { %p927_p12 = scmp.ne.s32.totalorder %s1267_s10, %s926_s30  ;;  %s931_s12 = sshll.u32 %s1087_s15, 4  ;;  %s932_s12 = int_to_ptr.vmem [resolvable:$false] %s931_s12 }
  0x65   : > { %s933_s3 = scalar_lea.vmem %s932_s12, 256  ;;  %p934_p4 = scmp.lt.s32.totalorder %s1267_s10, %s932_s12 }
  0x66   : > { %p929_p2 = pnand %p927_p12, %p913_p0  ;;  %p935_p13 = scmp.lt.s32.totalorder %s933_s3, %s926_s30 }
  0x68   : > { %p930_p5 = pneg %p929_p2  ;;  %p936_p6 = por %p935_p13, %p934_p4 }
  0x6a   : > { %p937_p10 = pnand %p936_p6, %p930_p5 }
  0x6c   : > { %940 = shalt.err (!%p937_p10)
}
  0x6d   : > { %794 = dma.hbm_to_vmem [thread:$0]  (!%p1269_p11), %s1264_s8, 128, %s1267_s10, %s220_s17  }
  0x6e   : > { %s241_s2 = scalar_lea.vmem [#allocation5], %s1258_s6  ;;  %s238_s7 = scalar_lea.sflag [#allocation6], %s237_s29 }
  0x6f   : > { %s248_s16 = sshll.u32 %s241_s2, 4  ;;  %s941_s9 = scalar_lea.hbm %s1276_s13, 128  ;;  %s249_s16 = int_to_ptr.vmem [resolvable:$true] %s248_s16 }
  0x70   : > { %p942_p4 = scmp.ne.s32.totalorder %s1276_s13, %s941_s9  ;;  %s946_s15 = scalar_lea.hbm %s1462_s1, 256 }
  0x71   : > { %p947_p3 = scmp.lt.u32.totalorder %s1276_s13, %s1462_s1  ;;  %p948_p7 = scmp.lt.u32.totalorder %s946_s15, %s941_s9 }
  0x72   : > { %p944_p5 = pnand %p942_p4, %p913_p0  ;;  %p950_p12 = scmp.lt.u32.totalorder %s941_s9, %s1276_s13 }
  0x73   : > { %p949_p9 = por %p948_p7, %p947_p3 }
  0x74   : > { %p945_p1 = pneg %p944_p5 }
  0x75   : > { %p951_p2 = por %p950_p12, %p949_p9 }
  0x77   : > { %p952_p13 = pnand %p951_p2, %p945_p1 }
  0x79   : > { %955 = shalt.err (!%p952_p13)
}
  0x7a   : > { %s956_s6 = scalar_lea.vmem %s249_s16, 128  ;;  %s1088_s8 = smov [#allocation5]  }
  0x7b   : > { %p957_p6 = scmp.ne.s32.totalorder %s249_s16, %s956_s6  ;;  %s961_s10 = sshll.u32 %s1088_s8, 4  ;;  %s962_s10 = int_to_ptr.vmem [resolvable:$false] %s961_s10 }
  0x7c   : > { %s963_s29 = scalar_lea.vmem %s962_s10, 256  ;;  %p964_p5 = scmp.lt.s32.totalorder %s249_s16, %s962_s10 }
  0x7d   : > { %p959_p10 = pnand %p957_p6, %p913_p0  ;;  %p965_p8 = scmp.lt.s32.totalorder %s963_s29, %s956_s6 }
  0x7f   : > { %p960_p4 = pneg %p959_p10  ;;  %p966_p3 = por %p965_p8, %p964_p5 }
  0x81   : > { %p967_p7 = pnand %p966_p3, %p960_p4 }
  0x83   : > { %970 = shalt.err (!%p967_p7)
}
  0x84   : > { %797 = dma.hbm_to_vmem [thread:$0]  (!%p1269_p11), %s1276_s13, 128, %s249_s16, %s238_s7  }
  0x85   : > { %p1482_p1 = scmp.ne.s32.totalorder %s1475_s26, 0 }
  0x86   : > { %s1329_s17 = sand.u32 (!%p1482_p1), 1, %s1073_s19   ;;  %p1483_p8 = scmp.ne.s32.totalorder (!%p1482_p1), %s1473_s24, 0 }
  0x87   : > { %257 = sbr.rel (%p1482_p1) target bundleno = 537 (0x219), region = 36  ;;  %s700_s2 = sshll.u32 (!%p1482_p1), %s1329_s17, 3 }
  0x88   : > { %s260_s9 = scalar_lea.sflag (!%p1482_p1), [#allocation3], %s1329_s17  ;;  %s1333_s28 = scalar_lea.vmem (!%p1482_p1), [#allocation2], %s700_s2 }
  0x8e   : > { %1044 = dma.done.wait (%p1483_p8), %s260_s9, 128  }
  0x8f   : > { %1046 = vsyncadd (%p1483_p8), %s260_s9, 4294967168  ;;  %s268_s11 = sand.u32 1, %s1150_s22   ;;  %s1340_s13 = scalar_lea.vmem [#allocation5], %s700_s2 }
  0x90   : > { %s269_s26 = scalar_lea.sflag [#allocation6], %s268_s11 }
  0x91   : > { %1048 = dma.done.wait (%p1483_p8), %s269_s26, 128  }
  0x92   : > { %1050 = vsyncadd (%p1483_p8), %s269_s26, 4294967168  ;;  %p1484_p11 = scmp.eq.s32.totalorder %s1150_s22, 0 }
  0x94   : > { %1052 = dma.done.wait (%p1484_p11), [#allocation6], 512   ;;  %p1485_p0 = pmov %p1484_p11 }
  0x96   : > { %1054 = vsyncadd (%p1485_p0), [#allocation6], 4294966784  ;;  %p1486_p9 = pmov %p1485_p0 }
  0x97   : > { %p1487_p12 = pmov %p1485_p0 }
  0x98   : > { %1056 = dma.done.wait (%p1486_p9), [#allocation9], 512  }
  0x99   : > { %1058 = vsyncadd (%p1487_p12), [#allocation9], 4294966784  ;;  %v1089_v0 = vmov 0.0|0.0   ;;  %vm1090_vm0 = vmmov 0   ;;  %v1091_v1 = vmov 0.0   ;;  %v318_v2 = vld [vmem:[#allocation7] sm:$0xff] }
  0x9a   : > { %756 = vmatprep.subr.bf16.mxu0 %v1089_v0  ;;  %762 = vmatprep.subr.bf16.mxu1 %v1089_v0  ;;  %v319_v3 = vld [vmem:[#allocation7 + $0x8] sm:$0xff]  ;;  %v397_v4 = vld [vmem:[#allocation8] sm:$0xff]  ;;  %v320_v7 = vld [vmem:[#allocation7 + $0x10] sm:$0xff]  ;;  %vm322_vm1 = vcmask 261120   ;;  %s704_s24 = sshll.u32 %s1329_s17, 5  ;;  %s1092_s7 = smov 64  }
  0x9b   : > { %742 = vmatprep.mubr.msk.f32.mxu0 %vm1090_vm0, %v1091_v1  ;;  %753 = vmatprep.mubr.msk.f32.mxu1 %vm1090_vm0, %v1091_v1  ;;  %v757_v5 = vpack.c.bf16 %v319_v3, %v318_v2  ;;  %v398_v6 = vld [vmem:[#allocation8 + $0x8] sm:$0xff]  ;;  %v321_v8 = vld [vmem:[#allocation7 + $0x18] sm:$0xff]  ;;  %v399_v10 = vld [vmem:[#allocation8 + $0x10] sm:$0xff]  ;;  %s1359_s16 = scalar_lea.vmem [#allocation10], %s704_s24  ;;  %s1093_s30 = smov 96  }
  0x9c   : > { %v763_v9 = vpack.c.bf16 %v398_v6, %v397_v4  ;;  %v400_v11 = vld [vmem:[#allocation8 + $0x18] sm:$0xff]  ;;  %v760_v12 = vpack.c.bf16 %v321_v8, %v320_v7  ;;  %v317_v14 = vld [vmem:[%s1333_s28] sm:$0xff]  ;;  %s316_s15 = scalar_lea.vmem [#allocation11], %s704_s24  ;;  %s1094_s12 = smov 32  }
  0x9d   : > { %758 = vmatpush3.bf16.msra.mxu0 %v757_v5  ;;  %v766_v13 = vpack.c.bf16 %v400_v11, %v399_v10  ;;  %v396_v15 = vld [vmem:[%s1340_s13] sm:$0xff]  ;;  %s527_s3 = sshll.u32 %s1359_s16, 4  ;;  %s543_s6 = sshll.u32 %s316_s15, 4  ;;  %s1370_s3 = int_to_ptr.vmem [resolvable:$true] %s527_s3  ;;  %s1372_s6 = int_to_ptr.vmem [resolvable:$true] %s543_s6 }
  0x9e   : > { %759 = vmatprep.subr.bf16.mxu0 %v1089_v0  ;;  %764 = vmatpush3.bf16.msra.mxu1 %v763_v9  ;;  %s722_s8 = sshll.u32 %s1150_s22, 9  ;;  %s509_s11 = scalar_lea.sflag [#allocation4], %s1329_s17 }
  0x9f   : > { %765 = vmatprep.subr.bf16.mxu1 %v1089_v0  ;;  %s1379_s2 = scalar_lea.hbm %s1465_s4, %s722_s8  ;;  %s1384_s28 = scalar_lea.hbm %s1466_s5, %s722_s8 }
  0xa0   : > { %s971_s26 = scalar_lea.vmem %s1370_s3, 512  ;;  %p1488_p13 = scmp.ne.s32.totalorder %s1480_s23, 0 }
  0xa1   : > { %761 = vmatpush3.bf16.msra.mxu0 %v760_v12  ;;  %p972_p2 = scmp.ne.s32.totalorder %s1370_s3, %s971_s26  ;;  %s1095_s13 = smov [#allocation10]  }
  0xa2   : > { %767 = vmatpush3.bf16.msra.mxu1 %v766_v13  ;;  %s975_s24 = sshll.u32 %s1095_s13, 4  ;;  %s976_s24 = int_to_ptr.vmem [resolvable:$false] %s975_s24 }
  0xa3   : > { %p973_p6 = pnand %p972_p2, %p1488_p13  ;;  %p978_p4 = scmp.lt.s32.totalorder %s1370_s3, %s976_s24 }
  0xa4   : > { %743 = vmatmul.mubr.msk.f32.vlgmr.msra.gmra.mrb[0].mxu0 %vm322_vm1, %v317_v14 }
  0xa5   : > { %754 = vmatmul.mubr.msk.f32.vlgmr.msra.gmra.mrb[0].mxu1 %vm322_vm1, %v396_v15  ;;  %p974_p10 = pneg %p973_p6 }
 0x177   : > { %v392_v16 = vpop.f32.mrb[0].mxu0 }
 0x178   : > { %474 = vst.msk [vmem:[%s1359_s16] sm:$0xff] %vm322_vm1, %v392_v16  ;;  %488 = vrot.lane.b32.xlu1 %v392_v16, %s1092_s7  ;;  %477 = vrot.lane.b32.xlu0 %v392_v16, %s1093_s30  ;;  %v744_v17 = vpop.f32.mrb[1].mxu0  ;;  %v470_v18 = vpop.f32.mrb[0].mxu1 }
 0x179   : > { %475 = vst.msk [vmem:[%s316_s15] sm:$0xff] %vm322_vm1, %v470_v18  ;;  %v755_v19 = vpop.f32.mrb[1].mxu1 }
 0x17c   : > { %493 = vrot.lane.b32.xlu1 %v470_v18, %s1092_s7  ;;  %483 = vrot.lane.b32.xlu0 %v470_v18, %s1093_s30  ;;  %s977_s7 = scalar_lea.vmem %s976_s24, 1024 }
 0x17d   : > { %p979_p5 = scmp.lt.s32.totalorder %s977_s7, %s971_s26 }
 0x17f   : > { %p980_p3 = por %p979_p5, %p978_p4 }
 0x180   : > { %503 = vrot.lane.b32.xlu1 %v470_v18, %s1094_s12  ;;  %498 = vrot.lane.b32.xlu0 %v392_v16, %s1094_s12 }
 0x181   : > { %p981_p7 = pnand %p980_p3, %p974_p10 }
 0x1ea   : > { %v489_v20 = vpop.permute.xlu1 %488  ;;  %v478_v21 = vpop.permute.xlu0 %477 }
 0x1eb   : > { %710 = vst.msk [vmem:[%s1359_s16 + $0x10] sm:$0xff] %vm322_vm1, %v489_v20  ;;  %708 = vst.msk [vmem:[%s1359_s16 + $0x8] sm:$0xff] %vm322_vm1, %v478_v21 }
 0x1ee   : > { %v494_v22 = vpop.permute.xlu1 %493  ;;  %v484_v23 = vpop.permute.xlu0 %483 }
 0x1ef   : > { %711 = vst.msk [vmem:[%s316_s15 + $0x10] sm:$0xff] %vm322_vm1, %v494_v22  ;;  %709 = vst.msk [vmem:[%s316_s15 + $0x8] sm:$0xff] %vm322_vm1, %v484_v23 }
 0x1f2   : > { %v504_v24 = vpop.permute.xlu1 %503  ;;  %v499_v25 = vpop.permute.xlu0 %498 }
 0x1f3   : > { %713 = vst.msk [vmem:[%s316_s15 + $0x18] sm:$0xff] %vm322_vm1, %v504_v24  ;;  %712 = vst.msk [vmem:[%s1359_s16 + $0x18] sm:$0xff] %vm322_vm1, %v499_v25 }
 0x1f4   : > { %984 = shalt.err (!%p981_p7)
}
 0x1f5   : > { %s985_s16 = scalar_lea.hbm %s1379_s2, 512  ;;  %s989_s12 = scalar_lea.hbm %s1465_s4, 1024 }
 0x1f6   : > { %p986_p1 = scmp.ne.s32.totalorder %s1379_s2, %s985_s16  ;;  %p990_p0 = scmp.lt.u32.totalorder %s1379_s2, %s1465_s4 }
 0x1f7   : > { %p991_p9 = scmp.lt.u32.totalorder %s989_s12, %s985_s16  ;;  %p993_p2 = scmp.lt.u32.totalorder %s985_s16, %s1379_s2 }
 0x1f8   : > { %p987_p8 = pnand %p986_p1, %p1488_p13 }
 0x1f9   : > { %p992_p12 = por %p991_p9, %p990_p0 }
 0x1fa   : > { %p988_p11 = pneg %p987_p8 }
 0x1fb   : > { %p994_p6 = por %p993_p2, %p992_p12 }
 0x1fd   : > { %p995_p10 = pnand %p994_p6, %p988_p11 }
 0x1ff   : > { %998 = shalt.err (!%p995_p10)
}
 0x200   : > { %s1096_s29 = smov 128   ;;  %s1097_s22 = smov 8  }
 0x201   : > { %780 = dma.vmem_to_hbm [thread:$0]  (%p1488_p13), %s1370_s3, 512, %s1379_s2, %s509_s11, %s1096_s29, %s1096_s29, %s1097_s22  }
 0x202   : > { %s514_s9 = scalar_lea.sflag [#allocation12], %s1329_s17  ;;  %s999_s26 = scalar_lea.vmem %s1372_s6, 512 }
 0x203   : > { %p1000_p4 = scmp.ne.s32.totalorder %s1372_s6, %s999_s26  ;;  %s1098_s13 = smov [#allocation11]  }
 0x204   : > { %s1003_s24 = sshll.u32 %s1098_s13, 4  ;;  %s1004_s24 = int_to_ptr.vmem [resolvable:$false] %s1003_s24 }
 0x205   : > { %p1001_p5 = pnand %p1000_p4, %p1488_p13  ;;  %s1005_s7 = scalar_lea.vmem %s1004_s24, 1024 }
 0x206   : > { %p1006_p7 = scmp.lt.s32.totalorder %s1372_s6, %s1004_s24  ;;  %p1007_p1 = scmp.lt.s32.totalorder %s1005_s7, %s999_s26 }
 0x207   : > { %p1002_p3 = pneg %p1001_p5 }
 0x208   : > { %p1008_p8 = por %p1007_p1, %p1006_p7 }
 0x20a   : > { %p1009_p11 = pnand %p1008_p8, %p1002_p3 }
 0x20c   : > { %1012 = shalt.err (!%p1009_p11)
}
 0x20d   : > { %s1013_s3 = scalar_lea.hbm %s1384_s28, 512  ;;  %s1017_s16 = scalar_lea.hbm %s1466_s5, 1024 }
 0x20e   : > { %p1014_p0 = scmp.ne.s32.totalorder %s1384_s28, %s1013_s3  ;;  %p1018_p2 = scmp.lt.u32.totalorder %s1384_s28, %s1466_s5 }
 0x20f   : > { %p1019_p6 = scmp.lt.u32.totalorder %s1017_s16, %s1013_s3  ;;  %p1021_p4 = scmp.lt.u32.totalorder %s1013_s3, %s1384_s28 }
 0x210   : > { %p1015_p9 = pnand %p1014_p0, %p1488_p13 }
 0x211   : > { %p1020_p10 = por %p1019_p6, %p1018_p2 }
 0x212   : > { %p1016_p12 = pneg %p1015_p9 }
 0x213   : > { %p1022_p5 = por %p1021_p4, %p1020_p10 }
 0x215   : > { %p1023_p3 = pnand %p1022_p5, %p1016_p12 }
 0x217   : > { %1026 = shalt.err (!%p1023_p3)
}
 0x218   : > { %781 = dma.vmem_to_hbm [thread:$0]  (%p1488_p13), %s1372_s6, 512, %s1384_s28, %s514_s9, %s1096_s29, %s1096_s29, %s1097_s22  }
 0x219 PF: > { %s558_s12 = sand.u32 1, %s1069_s18   ;;  %p1489_p7 = scmp.ne.s32.totalorder %s1474_s25, 0 }
 0x21a   : > { %p1490_p1 = scmp.ge.s32.totalorder %s1081_s21, 2  ;;  %s559_s8 = scalar_lea.sflag [#allocation4], %s558_s12 }
 0x21c   : > { %p799_p8 = pnand %p1490_p1, %p1489_p7 }
 0x21e   : > { %1060 = dma.done.wait (!%p799_p8), %s559_s8, 512  }
 0x21f   : > { %1062 = vsyncadd (!%p799_p8), %s559_s8, 4294966784  ;;  %s568_s23 = scalar_lea.sflag [#allocation12], %s558_s12 }
 0x220   : > { %1064 = dma.done.wait (!%p799_p8), %s568_s23, 512  }
 0x221   : > { %1066 = vsyncadd (!%p799_p8), %s568_s23, 4294966784  ;;  %p26_p13 = scmp.ge.s32.totalorder %s1239_s14, 4   ;;  %s1491_s18 = smov %s1073_s19 }
 0x222   : > { %s1492_s19 = smov %s1077_s20  ;;  %s1493_s20 = smov %s1255_s27 }
 0x223   : > { %s1494_s21 = smov %s1239_s14  ;;  %28 = sbr.rel (!%p26_p13) target bundleno = 13 (0xd), region = 125 }
 0x22a   :  { %573 = vsyncpa [#allocation3], 1 }
 0x22b   :  { %575 = vsyncpa [#allocation3 + $0x1], 1 }
 0x22c   :  { %576 = vsyncpa [#allocation6], 1 }
 0x22d   :  { %578 = vsyncpa [#allocation6 + $0x1], 1 }
 0x22e   :  { %579 = vsyncpa [#allocation9], 1 }
 0x22f   :  { %580 = vsyncpa [#allocation4], 1 }
 0x230   :  { %582 = vsyncpa [#allocation4 + $0x1], 1 }
 0x231   :  { %583 = vsyncpa [#allocation12], 1 }
 0x232   :  { %585 = vsyncpa [#allocation12 + $0x1], 1 }

// kernel: tpu_custom_call.1
= control target key start
LH: loop header
LB: loop body
LE: loop exit
PB: predicated region body
PF: predicated region fallthrough
CT: control target
= control target key end

     0   :  { %s1461_s0 = inlined_call_operand.hbm [shape: f32[2,8,32], index: 0, kind: input, shape index: {}]   ;;  %s1462_s1 = inlined_call_operand.hbm [shape: f32[2,8,32], index: 1, kind: input, shape index: {}]   ;;  %s1463_s2 = inlined_call_operand.hbm [shape: f32[32,128], index: 2, kind: input, shape index: {}]   ;;  %s1464_s3 = inlined_call_operand.hbm [shape: f32[32,128], index: 3, kind: input, shape index: {}]   ;;  %s1465_s4 = inlined_call_operand.hbm [shape: f32[2,4,8,32], index: 4, kind: output, shape index: {0}]   ;;  %s1466_s5 = inlined_call_operand.hbm [shape: f32[2,4,8,32], index: 5, kind: output, shape index: {1}]  }
   0x1   :  { %1471 = sst [smem:[#allocation19_spill]] %s1463_s2 }
   0x2   :  { %1472 = sst [smem:[#allocation20_spill]] %s1464_s3 }
   0x3   :  { %11 = vsyncpa [#allocation3], 0 }
   0x4   :  { %13 = vsyncpa [#allocation3 + $0x1], 0 }
   0x5   :  { %14 = vsyncpa [#allocation6], 0 }
   0x6   :  { %16 = vsyncpa [#allocation6 + $0x1], 0 }
   0x7   :  { %17 = vsyncpa [#allocation9], 0 }
   0x8   :  { %18 = vsyncpa [#allocation4], 0 }
   0x9   :  { %20 = vsyncpa [#allocation4 + $0x1], 0 }
   0xa   :  { %21 = vsyncpa [#allocation12], 0 }
   0xb   :  { %23 = vsyncpa [#allocation12 + $0x1], 0  ;;  %s1129_s18 = smov 0   ;;  %s1131_s19 = smov 0  }
   0xc   :  { %s1133_s20 = smov 0   ;;  %s1135_s21 = smov 0  }
   0xd LB: > { %s1150_s22 = sadd.s32 4294967295, %s1081_s21   ;;  %s690_s23 = sadd.s32 4294967294, %s1081_s21   ;;  %s1081_s21 = sphi %s1135_s21, %s1494_s21   ;;  %s1077_s20 = sphi %s1133_s20, %s1493_s20   ;;  %s1073_s19 = sphi %s1131_s19, %s1492_s19   ;;  %s1069_s18 = sphi %s1129_s18, %s1491_s18  }
   0xe   : > { %p49_p0 = scmp.ne.s32.totalorder %s1073_s19, %s1069_s18  ;;  %p1467_p1 = scmp.eq.s32.totalorder %s1150_s22, 0 }
   0xf   : > { %p147_p3 = scmp.eq.s32.totalorder %s690_s23, 1  ;;  %p691_p5 = scmp.ge.s32.totalorder %s1081_s21, 1 }
  0x10   : > { %p1159_p4 = por %p1467_p1, %p49_p0  ;;  %p180_p7 = scmp.lt.s32.totalorder %s1081_s21, 3 }
  0x11   : > { %p1164_p6 = por %p147_p3, %p49_p0  ;;  %s1083_s27 = smov [#allocation7]  }
  0x12   : > { %s1473_s24 = scalar_select %p1159_p4, 1, 0 }
  0x13   : > { %s1474_s25 = scalar_select %p1164_p6, 1, 0 }
  0x14   : > { %p1169_p8 = pnand %p691_p5, %p180_p7  ;;  %s192_s28 = sshll.u32 %s1083_s27, 4  ;;  %s1173_s28 = int_to_ptr.vmem [resolvable:$true] %s192_s28 }
  0x15   : > { %s1084_s30 = smov [#allocation8]   ;;  %s1477_s2 = sld [smem:[#allocation19_spill]] }
  0x16   : > { %s1475_s26 = scalar_select %p1169_p8, 1, 0 }
  0x17   : > { %p784_p9 = pneg %p1169_p8  ;;  %s205_s6 = sshll.u32 %s1084_s30, 4  ;;  %s1184_s6 = int_to_ptr.vmem [resolvable:$true] %s205_s6 }
  0x19   : > { %p1180_p11 = pnand %p784_p9, %p1467_p1 }
  0x1b   : > { %s855_s9 = scalar_lea.hbm %s1477_s2, 512  ;;  %p857_p13 = pneg %p1180_p11 }
  0x1c   : > { %p856_p12 = scmp.ne.s32.totalorder %s1477_s2, %s855_s9  ;;  %p862_p5 = scmp.lt.u32.totalorder %s855_s9, %s1477_s2 }
  0x1e   : > { %p858_p0 = pnand %p857_p13, %p856_p12 }
  0x20   : > { %p859_p3 = pneg %p858_p0 }
  0x22   : > { %p864_p7 = pnand %p862_p5, %p859_p3 }
  0x24   : > { %867 = shalt.err (!%p864_p7)
}
  0x25   : > { %s868_s14 = scalar_lea.vmem %s1173_s28, 512  ;;  %p876_p2 = scmp.lt.s32.totalorder %s1173_s28, %s1173_s28 }
  0x26   : > { %p869_p9 = scmp.ne.s32.totalorder %s1173_s28, %s868_s14  ;;  %p877_p12 = scmp.lt.s32.totalorder %s868_s14, %s868_s14 }
  0x28   : > { %p871_p10 = pnand %p869_p9, %p857_p13  ;;  %p878_p0 = por %p877_p12, %p876_p2 }
  0x2a   : > { %p872_p1 = pneg %p871_p10 }
  0x2c   : > { %p879_p6 = pnand %p878_p0, %p872_p1 }
  0x2e   : > { %882 = shalt.err (!%p879_p6)
}
  0x2f   : > { %s1085_s15 = smov 128   ;;  %s1086_s16 = smov 8  }
  0x30   : > { %787 = dma.hbm_to_vmem [thread:$0]  (!%p1180_p11), %s1477_s2, 512, %s1173_s28, [#allocation6], %s1085_s15, %s1085_s15, %s1086_s16  }
  0x31   : > { %s1478_s3 = sld [smem:[#allocation20_spill]] }
  0x37   : > { %s883_s7 = scalar_lea.hbm %s1478_s3, 512 }
  0x38   : > { %p884_p2 = scmp.ne.s32.totalorder %s1478_s3, %s883_s7  ;;  %p890_p10 = scmp.lt.u32.totalorder %s883_s7, %s1478_s3 }
  0x3a   : > { %p886_p1 = pnand %p884_p2, %p857_p13 }
  0x3c   : > { %p887_p6 = pneg %p886_p1 }
  0x3e   : > { %p892_p3 = pnand %p890_p10, %p887_p6 }
  0x40   : > { %895 = shalt.err (!%p892_p3)
}
  0x41   : > { %s896_s28 = scalar_lea.vmem %s1184_s6, 512  ;;  %p904_p12 = scmp.lt.s32.totalorder %s1184_s6, %s1184_s6 }
  0x42   : > { %p897_p5 = scmp.ne.s32.totalorder %s1184_s6, %s896_s28  ;;  %p905_p0 = scmp.lt.s32.totalorder %s896_s28, %s896_s28 }
  0x44   : > { %p899_p7 = pnand %p897_p5, %p857_p13  ;;  %p906_p2 = por %p905_p0, %p904_p12 }
  0x46   : > { %p900_p9 = pneg %p899_p7 }
  0x48   : > { %p907_p1 = pnand %p906_p2, %p900_p9 }
  0x4a   : > { %910 = shalt.err (!%p907_p1)
}
  0x4b   : > { %790 = dma.hbm_to_vmem [thread:$0]  (!%p1180_p11), %s1478_s3, 512, %s1184_s6, [#allocation9], %s1085_s15, %s1085_s15, %s1086_s16  }
  0x4c   : > { %s1239_s14 = sadd.s32 1, %s1081_s21   ;;  %s36_s29 = sadd.s32 1, %s1077_s20 }
  0x4d   : > { %s33_s17 = ssub.s32 %s1081_s21, %s1239_s14  ;;  %p43_p13 = scmp.ne.s32.totalorder %s1077_s20, %s1073_s19 }
  0x4e   : > { %p34_p6 = scmp.eq.s32.totalorder %s33_s17, 0  ;;  %p44_p10 = scmp.eq.s32.totalorder %s1081_s21, 0 }
  0x4f   : > { %p1479_p3 = scmp.eq.s32.totalorder %s1150_s22, 1  ;;  %p807_p7 = scmp.lt.s32.totalorder %s1081_s21, 2 }
  0x50   : > { %s1255_s27 = scalar_select %p34_p6, %s1077_s20, %s36_s29  }
  0x51   : > { %p1249_p5 = por %p1479_p3, %p43_p13  ;;  %p45_p9 = por %p44_p10, %p43_p13 }
  0x52   : > { %s219_s30 = sand.u32 1, %s1077_s20   ;;  %s696_s15 = sshll.u32 %s1081_s21, 7 }
  0x53   : > { %s1480_s23 = scalar_select %p1249_p5, 1, 0 }
  0x54   : > { %s1258_s6 = sshll.u32 %s219_s30, 3  ;;  %s1264_s8 = scalar_lea.hbm %s1461_s0, %s696_s15 }
  0x55   : > { %s223_s9 = scalar_lea.vmem [#allocation2], %s1258_s6  ;;  %p1269_p11 = pnand %p807_p7, %p45_p9 }
  0x56   : > { %s230_s10 = sshll.u32 %s223_s9, 4  ;;  %s1276_s13 = scalar_lea.hbm %s1462_s1, %s696_s15  ;;  %s1267_s10 = int_to_ptr.vmem [resolvable:$true] %s230_s10 }
  0x57   : > { %s237_s29 = sand.u32 1, %s1081_s21   ;;  %s220_s17 = scalar_lea.sflag [#allocation3], %s219_s30 }
  0x58   : > { %s911_s16 = scalar_lea.hbm %s1264_s8, 128  ;;  %p913_p0 = pneg %p1269_p11 }
  0x59   : > { %p912_p12 = scmp.ne.s32.totalorder %s1264_s8, %s911_s16  ;;  %s916_s2 = scalar_lea.hbm %s1461_s0, 256 }
  0x5a   : > { %p917_p13 = scmp.lt.u32.totalorder %s1264_s8, %s1461_s0  ;;  %p918_p6 = scmp.lt.u32.totalorder %s916_s2, %s911_s16 }
  0x5b   : > { %p914_p2 = pnand %p913_p0, %p912_p12  ;;  %p920_p3 = scmp.lt.u32.totalorder %s911_s16, %s1264_s8 }
  0x5c   : > { %p919_p10 = por %p918_p6, %p917_p13 }
  0x5d   : > { %p915_p1 = pneg %p914_p2 }
  0x5e   : > { %p921_p7 = por %p920_p3, %p919_p10 }
  0x60   : > { %p922_p9 = pnand %p921_p7, %p915_p1 }
  0x62   : > { %925 = shalt.err (!%p922_p9)
}
  0x63   : > { %s926_s30 = scalar_lea.vmem %s1267_s10, 128  ;;  %s1087_s15 = smov [#allocation2]  }
  0x64   : > { %p927_p12 = scmp.ne.s32.totalorder %s1267_s10, %s926_s30  ;;  %s931_s12 = sshll.u32 %s1087_s15, 4  ;;  %s932_s12 = int_to_ptr.vmem [resolvable:$false] %s931_s12 }
  0x65   : > { %s933_s3 = scalar_lea.vmem %s932_s12, 256  ;;  %p934_p4 = scmp.lt.s32.totalorder %s1267_s10, %s932_s12 }
  0x66   : > { %p929_p2 = pnand %p927_p12, %p913_p0  ;;  %p935_p13 = scmp.lt.s32.totalorder %s933_s3, %s926_s30 }
  0x68   : > { %p930_p5 = pneg %p929_p2  ;;  %p936_p6 = por %p935_p13, %p934_p4 }
  0x6a   : > { %p937_p10 = pnand %p936_p6, %p930_p5 }
  0x6c   : > { %940 = shalt.err (!%p937_p10)
}
  0x6d   : > { %794 = dma.hbm_to_vmem [thread:$0]  (!%p1269_p11), %s1264_s8, 128, %s1267_s10, %s220_s17  }
  0x6e   : > { %s241_s2 = scalar_lea.vmem [#allocation5], %s1258_s6  ;;  %s238_s7 = scalar_lea.sflag [#allocation6], %s237_s29 }
  0x6f   : > { %s248_s16 = sshll.u32 %s241_s2, 4  ;;  %s941_s9 = scalar_lea.hbm %s1276_s13, 128  ;;  %s249_s16 = int_to_ptr.vmem [resolvable:$true] %s248_s16 }
  0x70   : > { %p942_p4 = scmp.ne.s32.totalorder %s1276_s13, %s941_s9  ;;  %s946_s15 = scalar_lea.hbm %s1462_s1, 256 }
  0x71   : > { %p947_p3 = scmp.lt.u32.totalorder %s1276_s13, %s1462_s1  ;;  %p948_p7 = scmp.lt.u32.totalorder %s946_s15, %s941_s9 }
  0x72   : > { %p944_p5 = pnand %p942_p4, %p913_p0  ;;  %p950_p12 = scmp.lt.u32.totalorder %s941_s9, %s1276_s13 }
  0x73   : > { %p949_p9 = por %p948_p7, %p947_p3 }
  0x74   : > { %p945_p1 = pneg %p944_p5 }
  0x75   : > { %p951_p2 = por %p950_p12, %p949_p9 }
  0x77   : > { %p952_p13 = pnand %p951_p2, %p945_p1 }
  0x79   : > { %955 = shalt.err (!%p952_p13)
}
  0x7a   : > { %s956_s6 = scalar_lea.vmem %s249_s16, 128  ;;  %s1088_s8 = smov [#allocation5]  }
  0x7b   : > { %p957_p6 = scmp.ne.s32.totalorder %s249_s16, %s956_s6  ;;  %s961_s10 = sshll.u32 %s1088_s8, 4  ;;  %s962_s10 = int_to_ptr.vmem [resolvable:$false] %s961_s10 }
  0x7c   : > { %s963_s29 = scalar_lea.vmem %s962_s10, 256  ;;  %p964_p5 = scmp.lt.s32.totalorder %s249_s16, %s962_s10 }
  0x7d   : > { %p959_p10 = pnand %p957_p6, %p913_p0  ;;  %p965_p8 = scmp.lt.s32.totalorder %s963_s29, %s956_s6 }
  0x7f   : > { %p960_p4 = pneg %p959_p10  ;;  %p966_p3 = por %p965_p8, %p964_p5 }
  0x81   : > { %p967_p7 = pnand %p966_p3, %p960_p4 }
  0x83   : > { %970 = shalt.err (!%p967_p7)
}
  0x84   : > { %797 = dma.hbm_to_vmem [thread:$0]  (!%p1269_p11), %s1276_s13, 128, %s249_s16, %s238_s7  }
  0x85   : > { %p1482_p1 = scmp.ne.s32.totalorder %s1475_s26, 0 }
  0x86   : > { %s1329_s17 = sand.u32 (!%p1482_p1), 1, %s1073_s19   ;;  %p1483_p8 = scmp.ne.s32.totalorder (!%p1482_p1), %s1473_s24, 0 }
  0x87   : > { %257 = sbr.rel (%p1482_p1) target bundleno = 537 (0x219), region = 36  ;;  %s700_s2 = sshll.u32 (!%p1482_p1), %s1329_s17, 3 }
  0x88   : > { %s260_s9 = scalar_lea.sflag (!%p1482_p1), [#allocation3], %s1329_s17  ;;  %s1333_s28 = scalar_lea.vmem (!%p1482_p1), [#allocation2], %s700_s2 }
  0x8e   : > { %1044 = dma.done.wait (%p1483_p8), %s260_s9, 128  }
  0x8f   : > { %1046 = vsyncadd (%p1483_p8), %s260_s9, 4294967168  ;;  %s268_s11 = sand.u32 1, %s1150_s22   ;;  %s1340_s13 = scalar_lea.vmem [#allocation5], %s700_s2 }
  0x90   : > { %s269_s26 = scalar_lea.sflag [#allocation6], %s268_s11 }
  0x91   : > { %1048 = dma.done.wait (%p1483_p8), %s269_s26, 128  }
  0x92   : > { %1050 = vsyncadd (%p1483_p8), %s269_s26, 4294967168  ;;  %p1484_p11 = scmp.eq.s32.totalorder %s1150_s22, 0 }
  0x94   : > { %1052 = dma.done.wait (%p1484_p11), [#allocation6], 512   ;;  %p1485_p0 = pmov %p1484_p11 }
  0x96   : > { %1054 = vsyncadd (%p1485_p0), [#allocation6], 4294966784  ;;  %p1486_p9 = pmov %p1485_p0 }
  0x97   : > { %p1487_p12 = pmov %p1485_p0 }
  0x98   : > { %1056 = dma.done.wait (%p1486_p9), [#allocation9], 512  }
  0x99   : > { %1058 = vsyncadd (%p1487_p12), [#allocation9], 4294966784  ;;  %v1089_v0 = vmov 0.0|0.0   ;;  %vm1090_vm0 = vmmov 0   ;;  %v1091_v1 = vmov 0.0   ;;  %v318_v2 = vld [vmem:[#allocation7] sm:$0xff] }
  0x9a   : > { %756 = vmatprep.subr.bf16.mxu0 %v1089_v0  ;;  %762 = vmatprep.subr.bf16.mxu1 %v1089_v0  ;;  %v319_v3 = vld [vmem:[#allocation7 + $0x8] sm:$0xff]  ;;  %v397_v4 = vld [vmem:[#allocation8] sm:$0xff]  ;;  %v320_v7 = vld [vmem:[#allocation7 + $0x10] sm:$0xff]  ;;  %vm322_vm1 = vcmask 261120   ;;  %s704_s24 = sshll.u32 %s1329_s17, 5  ;;  %s1092_s7 = smov 64  }
  0x9b   : > { %742 = vmatprep.mubr.msk.f32.mxu0 %vm1090_vm0, %v1091_v1  ;;  %753 = vmatprep.mubr.msk.f32.mxu1 %vm1090_vm0, %v1091_v1  ;;  %v757_v5 = vpack.c.bf16 %v319_v3, %v318_v2  ;;  %v398_v6 = vld [vmem:[#allocation8 + $0x8] sm:$0xff]  ;;  %v321_v8 = vld [vmem:[#allocation7 + $0x18] sm:$0xff]  ;;  %v399_v10 = vld [vmem:[#allocation8 + $0x10] sm:$0xff]  ;;  %s1359_s16 = scalar_lea.vmem [#allocation10], %s704_s24  ;;  %s1093_s30 = smov 96  }
  0x9c   : > { %v763_v9 = vpack.c.bf16 %v398_v6, %v397_v4  ;;  %v400_v11 = vld [vmem:[#allocation8 + $0x18] sm:$0xff]  ;;  %v760_v12 = vpack.c.bf16 %v321_v8, %v320_v7  ;;  %v317_v14 = vld [vmem:[%s1333_s28] sm:$0xff]  ;;  %s316_s15 = scalar_lea.vmem [#allocation11], %s704_s24  ;;  %s1094_s12 = smov 32  }
  0x9d   : > { %758 = vmatpush3.bf16.msra.mxu0 %v757_v5  ;;  %v766_v13 = vpack.c.bf16 %v400_v11, %v399_v10  ;;  %v396_v15 = vld [vmem:[%s1340_s13] sm:$0xff]  ;;  %s527_s3 = sshll.u32 %s1359_s16, 4  ;;  %s543_s6 = sshll.u32 %s316_s15, 4  ;;  %s1370_s3 = int_to_ptr.vmem [resolvable:$true] %s527_s3  ;;  %s1372_s6 = int_to_ptr.vmem [resolvable:$true] %s543_s6 }
  0x9e   : > { %759 = vmatprep.subr.bf16.mxu0 %v1089_v0  ;;  %764 = vmatpush3.bf16.msra.mxu1 %v763_v9  ;;  %s722_s8 = sshll.u32 %s1150_s22, 9  ;;  %s509_s11 = scalar_lea.sflag [#allocation4], %s1329_s17 }
  0x9f   : > { %765 = vmatprep.subr.bf16.mxu1 %v1089_v0  ;;  %s1379_s2 = scalar_lea.hbm %s1465_s4, %s722_s8  ;;  %s1384_s28 = scalar_lea.hbm %s1466_s5, %s722_s8 }
  0xa0   : > { %s971_s26 = scalar_lea.vmem %s1370_s3, 512  ;;  %p1488_p13 = scmp.ne.s32.totalorder %s1480_s23, 0 }
  0xa1   : > { %761 = vmatpush3.bf16.msra.mxu0 %v760_v12  ;;  %p972_p2 = scmp.ne.s32.totalorder %s1370_s3, %s971_s26  ;;  %s1095_s13 = smov [#allocation10]  }
  0xa2   : > { %767 = vmatpush3.bf16.msra.mxu1 %v766_v13  ;;  %s975_s24 = sshll.u32 %s1095_s13, 4  ;;  %s976_s24 = int_to_ptr.vmem [resolvable:$false] %s975_s24 }
  0xa3   : > { %p973_p6 = pnand %p972_p2, %p1488_p13  ;;  %p978_p4 = scmp.lt.s32.totalorder %s1370_s3, %s976_s24 }
  0xa4   : > { %743 = vmatmul.mubr.msk.f32.vlgmr.msra.gmra.mrb[0].mxu0 %vm322_vm1, %v317_v14 }
  0xa5   : > { %754 = vmatmul.mubr.msk.f32.vlgmr.msra.gmra.mrb[0].mxu1 %vm322_vm1, %v396_v15  ;;  %p974_p10 = pneg %p973_p6 }
 0x177   : > { %v392_v16 = vpop.f32.mrb[0].mxu0 }
 0x178   : > { %474 = vst.msk [vmem:[%s1359_s16] sm:$0xff] %vm322_vm1, %v392_v16  ;;  %488 = vrot.lane.b32.xlu1 %v392_v16, %s1092_s7  ;;  %477 = vrot.lane.b32.xlu0 %v392_v16, %s1093_s30  ;;  %v744_v17 = vpop.f32.mrb[1].mxu0  ;;  %v470_v18 = vpop.f32.mrb[0].mxu1 }
 0x179   : > { %475 = vst.msk [vmem:[%s316_s15] sm:$0xff] %vm322_vm1, %v470_v18  ;;  %v755_v19 = vpop.f32.mrb[1].mxu1 }
 0x17c   : > { %493 = vrot.lane.b32.xlu1 %v470_v18, %s1092_s7  ;;  %483 = vrot.lane.b32.xlu0 %v470_v18, %s1093_s30  ;;  %s977_s7 = scalar_lea.vmem %s976_s24, 1024 }
 0x17d   : > { %p979_p5 = scmp.lt.s32.totalorder %s977_s7, %s971_s26 }
 0x17f   : > { %p980_p3 = por %p979_p5, %p978_p4 }
 0x180   : > { %503 = vrot.lane.b32.xlu1 %v470_v18, %s1094_s12  ;;  %498 = vrot.lane.b32.xlu0 %v392_v16, %s1094_s12 }
 0x181   : > { %p981_p7 = pnand %p980_p3, %p974_p10 }
 0x1ea   : > { %v489_v20 = vpop.permute.xlu1 %488  ;;  %v478_v21 = vpop.permute.xlu0 %477 }
 0x1eb   : > { %710 = vst.msk [vmem:[%s1359_s16 + $0x10] sm:$0xff] %vm322_vm1, %v489_v20  ;;  %708 = vst.msk [vmem:[%s1359_s16 + $0x8] sm:$0xff] %vm322_vm1, %v478_v21 }
 0x1ee   : > { %v494_v22 = vpop.permute.xlu1 %493  ;;  %v484_v23 = vpop.permute.xlu0 %483 }
 0x1ef   : > { %711 = vst.msk [vmem:[%s316_s15 + $0x10] sm:$0xff] %vm322_vm1, %v494_v22  ;;  %709 = vst.msk [vmem:[%s316_s15 + $0x8] sm:$0xff] %vm322_vm1, %v484_v23 }
 0x1f2   : > { %v504_v24 = vpop.permute.xlu1 %503  ;;  %v499_v25 = vpop.permute.xlu0 %498 }
 0x1f3   : > { %713 = vst.msk [vmem:[%s316_s15 + $0x18] sm:$0xff] %vm322_vm1, %v504_v24  ;;  %712 = vst.msk [vmem:[%s1359_s16 + $0x18] sm:$0xff] %vm322_vm1, %v499_v25 }
 0x1f4   : > { %984 = shalt.err (!%p981_p7)
}
 0x1f5   : > { %s985_s16 = scalar_lea.hbm %s1379_s2, 512  ;;  %s989_s12 = scalar_lea.hbm %s1465_s4, 1024 }
 0x1f6   : > { %p986_p1 = scmp.ne.s32.totalorder %s1379_s2, %s985_s16  ;;  %p990_p0 = scmp.lt.u32.totalorder %s1379_s2, %s1465_s4 }
 0x1f7   : > { %p991_p9 = scmp.lt.u32.totalorder %s989_s12, %s985_s16  ;;  %p993_p2 = scmp.lt.u32.totalorder %s985_s16, %s1379_s2 }
 0x1f8   : > { %p987_p8 = pnand %p986_p1, %p1488_p13 }
 0x1f9   : > { %p992_p12 = por %p991_p9, %p990_p0 }
 0x1fa   : > { %p988_p11 = pneg %p987_p8 }
 0x1fb   : > { %p994_p6 = por %p993_p2, %p992_p12 }
 0x1fd   : > { %p995_p10 = pnand %p994_p6, %p988_p11 }
 0x1ff   : > { %998 = shalt.err (!%p995_p10)
}
 0x200   : > { %s1096_s29 = smov 128   ;;  %s1097_s22 = smov 8  }
 0x201   : > { %780 = dma.vmem_to_hbm [thread:$0]  (%p1488_p13), %s1370_s3, 512, %s1379_s2, %s509_s11, %s1096_s29, %s1096_s29, %s1097_s22  }
 0x202   : > { %s514_s9 = scalar_lea.sflag [#allocation12], %s1329_s17  ;;  %s999_s26 = scalar_lea.vmem %s1372_s6, 512 }
 0x203   : > { %p1000_p4 = scmp.ne.s32.totalorder %s1372_s6, %s999_s26  ;;  %s1098_s13 = smov [#allocation11]  }
 0x204   : > { %s1003_s24 = sshll.u32 %s1098_s13, 4  ;;  %s1004_s24 = int_to_ptr.vmem [resolvable:$false] %s1003_s24 }
 0x205   : > { %p1001_p5 = pnand %p1000_p4, %p1488_p13  ;;  %s1005_s7 = scalar_lea.vmem %s1004_s24, 1024 }
 0x206   : > { %p1006_p7 = scmp.lt.s32.totalorder %s1372_s6, %s1004_s24  ;;  %p1007_p1 = scmp.lt.s32.totalorder %s1005_s7, %s999_s26 }
 0x207   : > { %p1002_p3 = pneg %p1001_p5 }
 0x208   : > { %p1008_p8 = por %p1007_p1, %p1006_p7 }
 0x20a   : > { %p1009_p11 = pnand %p1008_p8, %p1002_p3 }
 0x20c   : > { %1012 = shalt.err (!%p1009_p11)
}
 0x20d   : > { %s1013_s3 = scalar_lea.hbm %s1384_s28, 512  ;;  %s1017_s16 = scalar_lea.hbm %s1466_s5, 1024 }
 0x20e   : > { %p1014_p0 = scmp.ne.s32.totalorder %s1384_s28, %s1013_s3  ;;  %p1018_p2 = scmp.lt.u32.totalorder %s1384_s28, %s1466_s5 }
 0x20f   : > { %p1019_p6 = scmp.lt.u32.totalorder %s1017_s16, %s1013_s3  ;;  %p1021_p4 = scmp.lt.u32.totalorder %s1013_s3, %s1384_s28 }
 0x210   : > { %p1015_p9 = pnand %p1014_p0, %p1488_p13 }
 0x211   : > { %p1020_p10 = por %p1019_p6, %p1018_p2 }
 0x212   : > { %p1016_p12 = pneg %p1015_p9 }
 0x213   : > { %p1022_p5 = por %p1021_p4, %p1020_p10 }
 0x215   : > { %p1023_p3 = pnand %p1022_p5, %p1016_p12 }
 0x217   : > { %1026 = shalt.err (!%p1023_p3)
}
 0x218   : > { %781 = dma.vmem_to_hbm [thread:$0]  (%p1488_p13), %s1372_s6, 512, %s1384_s28, %s514_s9, %s1096_s29, %s1096_s29, %s1097_s22  }
 0x219 PF: > { %s558_s12 = sand.u32 1, %s1069_s18   ;;  %p1489_p7 = scmp.ne.s32.totalorder %s1474_s25, 0 }
 0x21a   : > { %p1490_p1 = scmp.ge.s32.totalorder %s1081_s21, 2  ;;  %s559_s8 = scalar_lea.sflag [#allocation4], %s558_s12 }
 0x21c   : > { %p799_p8 = pnand %p1490_p1, %p1489_p7 }
 0x21e   : > { %1060 = dma.done.wait (!%p799_p8), %s559_s8, 512  }
 0x21f   : > { %1062 = vsyncadd (!%p799_p8), %s559_s8, 4294966784  ;;  %s568_s23 = scalar_lea.sflag [#allocation12], %s558_s12 }
 0x220   : > { %1064 = dma.done.wait (!%p799_p8), %s568_s23, 512  }
 0x221   : > { %1066 = vsyncadd (!%p799_p8), %s568_s23, 4294966784  ;;  %p26_p13 = scmp.ge.s32.totalorder %s1239_s14, 4   ;;  %s1491_s18 = smov %s1073_s19 }
 0x222   : > { %s1492_s19 = smov %s1077_s20  ;;  %s1493_s20 = smov %s1255_s27 }
 0x223   : > { %s1494_s21 = smov %s1239_s14  ;;  %28 = sbr.rel (!%p26_p13) target bundleno = 13 (0xd), region = 125 }
 0x22a   :  { %573 = vsyncpa [#allocation3], 1 }
 0x22b   :  { %575 = vsyncpa [#allocation3 + $0x1], 1 }
 0x22c   :  { %576 = vsyncpa [#allocation6], 1 }
 0x22d   :  { %578 = vsyncpa [#allocation6 + $0x1], 1 }
 0x22e   :  { %579 = vsyncpa [#allocation9], 1 }
 0x22f   :  { %580 = vsyncpa [#allocation4], 1 }
 0x230   :  { %582 = vsyncpa [#allocation4 + $0x1], 1 }
 0x231   :  { %583 = vsyncpa [#allocation12], 1 }
 0x232   :  { %585 = vsyncpa [#allocation12 + $0x1], 1 }

</bundles_post_ra>
